<compile_context>
chip_gen: v6e
topology: v6e:2x2x1
jax: 0.10.0
libtpu: 0.0.40
codegen_flags: <defaults>
</compile_context>

<pallas_src>
import functools

import jax
import jax.numpy as jnp
from jax import lax
from jax.experimental import pallas as pl
from jax.experimental.pallas import tpu as pltpu


def _mhsa_kernel(nb, N, head, Dh, z_ref, w_ref, o_ref):
    """nb = batches in this block.

    z_ref : (nb*N, D)  input rows (batches stacked along sublanes)
    w_ref : (D, 3*D)   fused [Wq^T*scale | Wk^T | Wv^T], constant across grid
    o_ref : (nb*N, D)  output rows (final layout, no wrapper glue)
    """
    D = head * Dh

    # One wide MXU projection: (nb*N, D) @ (D, 3D) -> [Q | K | V], f32 acc.
    # Operands may be bf16 (storage/DMA win); accumulation stays f32, so all
    # attention math below is f32.
    proj = jnp.dot(z_ref[...], w_ref[...], preferred_element_type=jnp.float32)

    head_outs = []
    for h in range(head):                       # head=3, unrolled at trace time
        q = proj[:, h * Dh:(h + 1) * Dh]        # 1/sqrt(Dh) already folded in
        k = proj[:, D + h * Dh:D + (h + 1) * Dh]
        v = proj[:, 2 * D + h * Dh:2 * D + (h + 1) * Dh]

        rows = []
        for b in range(nb):                     # nb is small & static -> unroll
            r = slice(b * N, (b + 1) * N)
            qb, kb, vb = q[r], k[r], v[r]

            # scores = q @ k^T without materializing k.T (NT dot_general).
            s = lax.dot_general(qb, kb, (((1,), (1,)), ((), ())),
                                preferred_element_type=jnp.float32)   # (N, N)

            # Numerically stable softmax, exact division (kernel is DMA-bound,
            # the exact path is free and keeps the tolerance tight).
            m = jnp.max(s, axis=-1, keepdims=True)
            p = jnp.exp(s - m)
            attn = p / jnp.sum(p, axis=-1, keepdims=True)

            rows.append(jnp.dot(attn, vb,
                                preferred_element_type=jnp.float32))  # (N, Dh)
        head_outs.append(jnp.concatenate(rows, axis=0) if nb > 1 else rows[0])

    # Single full-width, lane-dense store (heads along the lane axis).
    o_ref[...] = jnp.concatenate(head_outs, axis=-1).astype(o_ref.dtype)


def make_mhsa(wq, wk, wv, head, *, use_bf16=True, batch_parallel=False):
    """Build the MHSA forward with the weight fusion hoisted to init time.

    wq/wk/wv: (D, D) PyTorch nn.Linear convention (out, in), no bias.
    use_bf16: store weights/activations in bf16 (f32 MXU accumulation).
    batch_parallel: grid=(B,) + "parallel" (v7x 2-TC variant); default is a
      single collapsed grid step (best for single-TC v5e/v6e).
    """
    D = wq.shape[0]
    assert D % head == 0
    Dh = D // head
    scale = 1.0 / (Dh ** 0.5)

    # PyTorch nn.Linear: y = x @ W^T; q.view(B, N, H, Dh) splits the OUTPUT
    # dim with head outermost -> head h uses columns [h*Dh, (h+1)*Dh) of W^T.
    # Fuse Q/K/V into one (D, 3D) matrix and fold the attention scale into Q.
    # Done ONCE here, not per forward call.
    w_dtype = jnp.bfloat16 if use_bf16 else jnp.float32
    w_qkv = jnp.concatenate([(wq * scale).T, wk.T, wv.T], axis=1).astype(w_dtype)
    w_qkv = jax.block_until_ready(w_qkv)
    compute_dtype = jnp.bfloat16 if use_bf16 else jnp.float32

    @jax.jit
    def fwd(z):
        B, N, D_ = z.shape
        assert D_ == D
        nb = 1 if batch_parallel else B          # batches per grid step
        BN = nb * N
        grid = (B // nb,)

        cost = pl.CostEstimate(
            flops=2 * B * N * D * (3 * D) + 4 * B * head * N * N * Dh,
            transcendentals=B * head * N * N,
            bytes_accessed=(w_qkv.size * w_qkv.dtype.itemsize
                            + B * N * D * jnp.dtype(compute_dtype).itemsize
                            + B * N * D * 4),
        )

        kernel = functools.partial(_mhsa_kernel, nb, N, head, Dh)

        out = pl.pallas_call(
            kernel,
            out_shape=jax.ShapeDtypeStruct((B * N, D), jnp.float32),
            grid_spec=pltpu.PrefetchScalarGridSpec(
                num_scalar_prefetch=0,
                grid=grid,
                in_specs=[
                    pl.BlockSpec((BN, D), lambda i: (i, 0)),      # activations
                    pl.BlockSpec((D, 3 * D), lambda i: (0, 0)),   # fused weight
                ],
                out_specs=pl.BlockSpec((BN, D), lambda i: (i, 0)),
            ),
            compiler_params=pltpu.CompilerParams(
                dimension_semantics=(("parallel",) if batch_parallel
                                     else ("arbitrary",))),
            cost_estimate=cost,
        )(z.reshape(B * N, D).astype(compute_dtype), w_qkv)

        return out.reshape(B, N, D).astype(z.dtype)

    return fwd


def _reference(z, wq, wk, wv, head):
    B, N, D = z.shape
    Dh = D // head
    q = (z @ wq.T).reshape(B, N, head, Dh).transpose(0, 2, 1, 3)
    k = (z @ wk.T).reshape(B, N, head, Dh).transpose(0, 2, 1, 3)
    v = (z @ wv.T).reshape(B, N, head, Dh).transpose(0, 2, 1, 3)
    dots = jnp.einsum("bhqd,bhkd->bhqk", q, k) / (Dh ** 0.5)
    attn = jax.nn.softmax(dots, axis=-1)
    out = jnp.einsum("bhqk,bhkd->bhqd", attn, v)
    return out.transpose(0, 2, 1, 3).reshape(B, N, D)


if __name__ == "__main__":
    # Module defaults: emb_dim=384, head=3 -> head_dim=128.
    B, N, D, H = 2, 16, 384, 3

    key = jax.random.PRNGKey(0)
    kz, kq, kk, kv = jax.random.split(key, 4)

    z = jax.random.normal(kz, (B, N, D), dtype=jnp.float32)
    # Deterministic synthetic weights (PyTorch Linear shape: (out, in)).
    bound = 1.0 / (D ** 0.5)
    wq = jax.random.uniform(kq, (D, D), jnp.float32, -bound, bound)
    wk = jax.random.uniform(kk, (D, D), jnp.float32, -bound, bound)
    wv = jax.random.uniform(kv, (D, D), jnp.float32, -bound, bound)

    ref = _reference(z, wq, wk, wv, H)

    # f32 path, single collapsed grid step (best default for v5e/v6e).
    mhsa_f32 = make_mhsa(wq, wk, wv, H, use_bf16=False)
    out = jax.block_until_ready(mhsa_f32(z))
    assert out.shape == (B, N, D)
    assert jnp.allclose(out, ref, atol=2e-3, rtol=2e-3), "f32 path mismatch"

    # bf16-weight path (recommended default: halves the dominant weight DMA,
    # doubles MXU rate on v6e/v7x).  bf16 operands -> ~1e-2 level tolerance.
    mhsa_bf16 = make_mhsa(wq, wk, wv, H)
    out_bf16 = jax.block_until_ready(mhsa_bf16(z))
    assert jnp.allclose(out_bf16, ref, atol=2e-2, rtol=2e-2), "bf16 path mismatch"

    # v7x variant: one batch per grid step, "parallel" so the 2 TCs split B
    # (each TC re-fetches the ~0.85 MiB bf16 weight; measure vs the collapsed
    # variant on v7x and pick).
    mhsa_v7x = make_mhsa(wq, wk, wv, H, batch_parallel=True)
    out_bp = jax.block_until_ready(mhsa_v7x(z))
    assert jnp.allclose(out_bp, ref, atol=2e-2, rtol=2e-2), "v7x path mismatch"

    print("KERNEL_OK")
</pallas_src>

<mosaic_0001>
module attributes {stable_mosaic.version = 11 : i64} {
  func.func @_mhsa_kernel(%arg0: i32, %arg1: memref<32x384xf32, #tpu.memory_space<vmem>>, %arg2: memref<384x1152xf32, #tpu.memory_space<vmem>>, %arg3: memref<32x384xf32, #tpu.memory_space<vmem>>) attributes {dimension_semantics = [#tpu.dimension_semantics<arbitrary>], iteration_bounds = array<i64: 1>, scalar_prefetch = 0 : i64, scratch_operands = 0 : i64, tpu.core_type = #tpu.core_type<tc>, window_params = [{transform_indices = @transform_0, window_bounds = array<i64: 32, 384>}, {pipeline_mode = #tpu.pipeline_mode<synchronous>, transform_indices = @transform_1, window_bounds = array<i64: 384, 1152>}, {transform_indices = @transform_2, window_bounds = array<i64: 32, 384>}]} {
    %c0 = arith.constant 0 : index
    %c0_0 = arith.constant 0 : index
    %0 = vector.load %arg1[%c0, %c0_0] : memref<32x384xf32, #tpu.memory_space<vmem>>, vector<32x384xf32>
    %c0_1 = arith.constant 0 : index
    %c0_2 = arith.constant 0 : index
    %1 = vector.load %arg2[%c0_1, %c0_2] : memref<384x1152xf32, #tpu.memory_space<vmem>>, vector<384x1152xf32>
    %cst = arith.constant dense<0.000000e+00> : vector<32x1152xf32>
    %2 = tpu.matmul %0, %1, %cst {dimension_numbers = #tpu.dot_dimension_numbers<[1], [0], [0], [1], [0, 0, 1, 1], [], []>} : vector<32x384xf32>, vector<384x1152xf32>, vector<32x1152xf32> -> vector<32x1152xf32>
    %3 = vector.extract_strided_slice %2 {offsets = [0, 0], sizes = [32, 128], strides = [1, 1]} : vector<32x1152xf32> to vector<32x128xf32>
    %4 = vector.extract_strided_slice %2 {offsets = [0, 384], sizes = [32, 128], strides = [1, 1]} : vector<32x1152xf32> to vector<32x128xf32>
    %5 = vector.extract_strided_slice %2 {offsets = [0, 768], sizes = [32, 128], strides = [1, 1]} : vector<32x1152xf32> to vector<32x128xf32>
    %6 = vector.extract_strided_slice %3 {offsets = [0, 0], sizes = [16, 128], strides = [1, 1]} : vector<32x128xf32> to vector<16x128xf32>
    %7 = vector.extract_strided_slice %4 {offsets = [0, 0], sizes = [16, 128], strides = [1, 1]} : vector<32x128xf32> to vector<16x128xf32>
    %8 = vector.extract_strided_slice %5 {offsets = [0, 0], sizes = [16, 128], strides = [1, 1]} : vector<32x128xf32> to vector<16x128xf32>
    %cst_3 = arith.constant dense<0.000000e+00> : vector<16x16xf32>
    %9 = tpu.matmul %6, %7, %cst_3 {dimension_numbers = #tpu.dot_dimension_numbers<[1], [1], [0], [0], [0, 0, 1, 0], [], []>} : vector<16x128xf32>, vector<16x128xf32>, vector<16x16xf32> -> vector<16x16xf32>
    %cst_4 = arith.constant dense<0xFF800000> : vector<16xf32>
    %10 = vector.multi_reduction <maximumf>, %9, %cst_4 [1] : vector<16x16xf32> to vector<16xf32>
    %11 = vector.shape_cast %10 : vector<16xf32> to vector<16x1xf32>
    %12 = vector.broadcast %11 : vector<16x1xf32> to vector<16x16xf32>
    %13 = arith.subf %9, %12 : vector<16x16xf32>
    %14 = math.exp %13 : vector<16x16xf32>
    %cst_5 = arith.constant dense<0.000000e+00> : vector<16xf32>
    %15 = vector.multi_reduction <add>, %14, %cst_5 [1] : vector<16x16xf32> to vector<16xf32>
    %16 = vector.shape_cast %15 : vector<16xf32> to vector<16x1xf32>
    %17 = vector.broadcast %16 : vector<16x1xf32> to vector<16x16xf32>
    %18 = arith.divf %14, %17 : vector<16x16xf32>
    %cst_6 = arith.constant dense<0.000000e+00> : vector<16x128xf32>
    %19 = tpu.matmul %18, %8, %cst_6 {dimension_numbers = #tpu.dot_dimension_numbers<[1], [0], [0], [1], [0, 0, 1, 1], [], []>} : vector<16x16xf32>, vector<16x128xf32>, vector<16x128xf32> -> vector<16x128xf32>
    %20 = vector.extract_strided_slice %3 {offsets = [16, 0], sizes = [16, 128], strides = [1, 1]} : vector<32x128xf32> to vector<16x128xf32>
    %21 = vector.extract_strided_slice %4 {offsets = [16, 0], sizes = [16, 128], strides = [1, 1]} : vector<32x128xf32> to vector<16x128xf32>
    %22 = vector.extract_strided_slice %5 {offsets = [16, 0], sizes = [16, 128], strides = [1, 1]} : vector<32x128xf32> to vector<16x128xf32>
    %cst_7 = arith.constant dense<0.000000e+00> : vector<16x16xf32>
    %23 = tpu.matmul %20, %21, %cst_7 {dimension_numbers = #tpu.dot_dimension_numbers<[1], [1], [0], [0], [0, 0, 1, 0], [], []>} : vector<16x128xf32>, vector<16x128xf32>, vector<16x16xf32> -> vector<16x16xf32>
    %cst_8 = arith.constant dense<0xFF800000> : vector<16xf32>
    %24 = vector.multi_reduction <maximumf>, %23, %cst_8 [1] : vector<16x16xf32> to vector<16xf32>
    %25 = vector.shape_cast %24 : vector<16xf32> to vector<16x1xf32>
    %26 = vector.broadcast %25 : vector<16x1xf32> to vector<16x16xf32>
    %27 = arith.subf %23, %26 : vector<16x16xf32>
    %28 = math.exp %27 : vector<16x16xf32>
    %cst_9 = arith.constant dense<0.000000e+00> : vector<16xf32>
    %29 = vector.multi_reduction <add>, %28, %cst_9 [1] : vector<16x16xf32> to vector<16xf32>
    %30 = vector.shape_cast %29 : vector<16xf32> to vector<16x1xf32>
    %31 = vector.broadcast %30 : vector<16x1xf32> to vector<16x16xf32>
    %32 = arith.divf %28, %31 : vector<16x16xf32>
    %cst_10 = arith.constant dense<0.000000e+00> : vector<16x128xf32>
    %33 = tpu.matmul %32, %22, %cst_10 {dimension_numbers = #tpu.dot_dimension_numbers<[1], [0], [0], [1], [0, 0, 1, 1], [], []>} : vector<16x16xf32>, vector<16x128xf32>, vector<16x128xf32> -> vector<16x128xf32>
    %34 = tpu.concatenate %19, %33 in 0 : vector<16x128xf32>, vector<16x128xf32> -> vector<32x128xf32>
    %35 = vector.extract_strided_slice %2 {offsets = [0, 128], sizes = [32, 128], strides = [1, 1]} : vector<32x1152xf32> to vector<32x128xf32>
    %36 = vector.extract_strided_slice %2 {offsets = [0, 512], sizes = [32, 128], strides = [1, 1]} : vector<32x1152xf32> to vector<32x128xf32>
    %37 = vector.extract_strided_slice %2 {offsets = [0, 896], sizes = [32, 128], strides = [1, 1]} : vector<32x1152xf32> to vector<32x128xf32>
    %38 = vector.extract_strided_slice %35 {offsets = [0, 0], sizes = [16, 128], strides = [1, 1]} : vector<32x128xf32> to vector<16x128xf32>
    %39 = vector.extract_strided_slice %36 {offsets = [0, 0], sizes = [16, 128], strides = [1, 1]} : vector<32x128xf32> to vector<16x128xf32>
    %40 = vector.extract_strided_slice %37 {offsets = [0, 0], sizes = [16, 128], strides = [1, 1]} : vector<32x128xf32> to vector<16x128xf32>
    %cst_11 = arith.constant dense<0.000000e+00> : vector<16x16xf32>
    %41 = tpu.matmul %38, %39, %cst_11 {dimension_numbers = #tpu.dot_dimension_numbers<[1], [1], [0], [0], [0, 0, 1, 0], [], []>} : vector<16x128xf32>, vector<16x128xf32>, vector<16x16xf32> -> vector<16x16xf32>
    %cst_12 = arith.constant dense<0xFF800000> : vector<16xf32>
    %42 = vector.multi_reduction <maximumf>, %41, %cst_12 [1] : vector<16x16xf32> to vector<16xf32>
    %43 = vector.shape_cast %42 : vector<16xf32> to vector<16x1xf32>
    %44 = vector.broadcast %43 : vector<16x1xf32> to vector<16x16xf32>
    %45 = arith.subf %41, %44 : vector<16x16xf32>
    %46 = math.exp %45 : vector<16x16xf32>
    %cst_13 = arith.constant dense<0.000000e+00> : vector<16xf32>
    %47 = vector.multi_reduction <add>, %46, %cst_13 [1] : vector<16x16xf32> to vector<16xf32>
    %48 = vector.shape_cast %47 : vector<16xf32> to vector<16x1xf32>
    %49 = vector.broadcast %48 : vector<16x1xf32> to vector<16x16xf32>
    %50 = arith.divf %46, %49 : vector<16x16xf32>
    %cst_14 = arith.constant dense<0.000000e+00> : vector<16x128xf32>
    %51 = tpu.matmul %50, %40, %cst_14 {dimension_numbers = #tpu.dot_dimension_numbers<[1], [0], [0], [1], [0, 0, 1, 1], [], []>} : vector<16x16xf32>, vector<16x128xf32>, vector<16x128xf32> -> vector<16x128xf32>
    %52 = vector.extract_strided_slice %35 {offsets = [16, 0], sizes = [16, 128], strides = [1, 1]} : vector<32x128xf32> to vector<16x128xf32>
    %53 = vector.extract_strided_slice %36 {offsets = [16, 0], sizes = [16, 128], strides = [1, 1]} : vector<32x128xf32> to vector<16x128xf32>
    %54 = vector.extract_strided_slice %37 {offsets = [16, 0], sizes = [16, 128], strides = [1, 1]} : vector<32x128xf32> to vector<16x128xf32>
    %cst_15 = arith.constant dense<0.000000e+00> : vector<16x16xf32>
    %55 = tpu.matmul %52, %53, %cst_15 {dimension_numbers = #tpu.dot_dimension_numbers<[1], [1], [0], [0], [0, 0, 1, 0], [], []>} : vector<16x128xf32>, vector<16x128xf32>, vector<16x16xf32> -> vector<16x16xf32>
    %cst_16 = arith.constant dense<0xFF800000> : vector<16xf32>
    %56 = vector.multi_reduction <maximumf>, %55, %cst_16 [1] : vector<16x16xf32> to vector<16xf32>
    %57 = vector.shape_cast %56 : vector<16xf32> to vector<16x1xf32>
    %58 = vector.broadcast %57 : vector<16x1xf32> to vector<16x16xf32>
    %59 = arith.subf %55, %58 : vector<16x16xf32>
    %60 = math.exp %59 : vector<16x16xf32>
    %cst_17 = arith.constant dense<0.000000e+00> : vector<16xf32>
    %61 = vector.multi_reduction <add>, %60, %cst_17 [1] : vector<16x16xf32> to vector<16xf32>
    %62 = vector.shape_cast %61 : vector<16xf32> to vector<16x1xf32>
    %63 = vector.broadcast %62 : vector<16x1xf32> to vector<16x16xf32>
    %64 = arith.divf %60, %63 : vector<16x16xf32>
    %cst_18 = arith.constant dense<0.000000e+00> : vector<16x128xf32>
    %65 = tpu.matmul %64, %54, %cst_18 {dimension_numbers = #tpu.dot_dimension_numbers<[1], [0], [0], [1], [0, 0, 1, 1], [], []>} : vector<16x16xf32>, vector<16x128xf32>, vector<16x128xf32> -> vector<16x128xf32>
    %66 = tpu.concatenate %51, %65 in 0 : vector<16x128xf32>, vector<16x128xf32> -> vector<32x128xf32>
    %67 = vector.extract_strided_slice %2 {offsets = [0, 256], sizes = [32, 128], strides = [1, 1]} : vector<32x1152xf32> to vector<32x128xf32>
    %68 = vector.extract_strided_slice %2 {offsets = [0, 640], sizes = [32, 128], strides = [1, 1]} : vector<32x1152xf32> to vector<32x128xf32>
    %69 = vector.extract_strided_slice %2 {offsets = [0, 1024], sizes = [32, 128], strides = [1, 1]} : vector<32x1152xf32> to vector<32x128xf32>
    %70 = vector.extract_strided_slice %67 {offsets = [0, 0], sizes = [16, 128], strides = [1, 1]} : vector<32x128xf32> to vector<16x128xf32>
    %71 = vector.extract_strided_slice %68 {offsets = [0, 0], sizes = [16, 128], strides = [1, 1]} : vector<32x128xf32> to vector<16x128xf32>
    %72 = vector.extract_strided_slice %69 {offsets = [0, 0], sizes = [16, 128], strides = [1, 1]} : vector<32x128xf32> to vector<16x128xf32>
    %cst_19 = arith.constant dense<0.000000e+00> : vector<16x16xf32>
    %73 = tpu.matmul %70, %71, %cst_19 {dimension_numbers = #tpu.dot_dimension_numbers<[1], [1], [0], [0], [0, 0, 1, 0], [], []>} : vector<16x128xf32>, vector<16x128xf32>, vector<16x16xf32> -> vector<16x16xf32>
    %cst_20 = arith.constant dense<0xFF800000> : vector<16xf32>
    %74 = vector.multi_reduction <maximumf>, %73, %cst_20 [1] : vector<16x16xf32> to vector<16xf32>
    %75 = vector.shape_cast %74 : vector<16xf32> to vector<16x1xf32>
    %76 = vector.broadcast %75 : vector<16x1xf32> to vector<16x16xf32>
    %77 = arith.subf %73, %76 : vector<16x16xf32>
    %78 = math.exp %77 : vector<16x16xf32>
    %cst_21 = arith.constant dense<0.000000e+00> : vector<16xf32>
    %79 = vector.multi_reduction <add>, %78, %cst_21 [1] : vector<16x16xf32> to vector<16xf32>
    %80 = vector.shape_cast %79 : vector<16xf32> to vector<16x1xf32>
    %81 = vector.broadcast %80 : vector<16x1xf32> to vector<16x16xf32>
    %82 = arith.divf %78, %81 : vector<16x16xf32>
    %cst_22 = arith.constant dense<0.000000e+00> : vector<16x128xf32>
    %83 = tpu.matmul %82, %72, %cst_22 {dimension_numbers = #tpu.dot_dimension_numbers<[1], [0], [0], [1], [0, 0, 1, 1], [], []>} : vector<16x16xf32>, vector<16x128xf32>, vector<16x128xf32> -> vector<16x128xf32>
    %84 = vector.extract_strided_slice %67 {offsets = [16, 0], sizes = [16, 128], strides = [1, 1]} : vector<32x128xf32> to vector<16x128xf32>
    %85 = vector.extract_strided_slice %68 {offsets = [16, 0], sizes = [16, 128], strides = [1, 1]} : vector<32x128xf32> to vector<16x128xf32>
    %86 = vector.extract_strided_slice %69 {offsets = [16, 0], sizes = [16, 128], strides = [1, 1]} : vector<32x128xf32> to vector<16x128xf32>
    %cst_23 = arith.constant dense<0.000000e+00> : vector<16x16xf32>
    %87 = tpu.matmul %84, %85, %cst_23 {dimension_numbers = #tpu.dot_dimension_numbers<[1], [1], [0], [0], [0, 0, 1, 0], [], []>} : vector<16x128xf32>, vector<16x128xf32>, vector<16x16xf32> -> vector<16x16xf32>
    %cst_24 = arith.constant dense<0xFF800000> : vector<16xf32>
    %88 = vector.multi_reduction <maximumf>, %87, %cst_24 [1] : vector<16x16xf32> to vector<16xf32>
    %89 = vector.shape_cast %88 : vector<16xf32> to vector<16x1xf32>
    %90 = vector.broadcast %89 : vector<16x1xf32> to vector<16x16xf32>
    %91 = arith.subf %87, %90 : vector<16x16xf32>
    %92 = math.exp %91 : vector<16x16xf32>
    %cst_25 = arith.constant dense<0.000000e+00> : vector<16xf32>
    %93 = vector.multi_reduction <add>, %92, %cst_25 [1] : vector<16x16xf32> to vector<16xf32>
    %94 = vector.shape_cast %93 : vector<16xf32> to vector<16x1xf32>
    %95 = vector.broadcast %94 : vector<16x1xf32> to vector<16x16xf32>
    %96 = arith.divf %92, %95 : vector<16x16xf32>
    %cst_26 = arith.constant dense<0.000000e+00> : vector<16x128xf32>
    %97 = tpu.matmul %96, %86, %cst_26 {dimension_numbers = #tpu.dot_dimension_numbers<[1], [0], [0], [1], [0, 0, 1, 1], [], []>} : vector<16x16xf32>, vector<16x128xf32>, vector<16x128xf32> -> vector<16x128xf32>
    %98 = tpu.concatenate %83, %97 in 0 : vector<16x128xf32>, vector<16x128xf32> -> vector<32x128xf32>
    %99 = tpu.concatenate %34, %66, %98 in 1 : vector<32x128xf32>, vector<32x128xf32>, vector<32x128xf32> -> vector<32x384xf32>
    %c0_27 = arith.constant 0 : index
    %c0_28 = arith.constant 0 : index
    %100 = vector.load %arg3[%c0_27, %c0_28] : memref<32x384xf32, #tpu.memory_space<vmem>>, vector<32x384xf32>
    tpu.vector_store %arg3[%c0_27, %c0_28], %99 {strides = array<i32>} : memref<32x384xf32, #tpu.memory_space<vmem>>, vector<32x384xf32>,
    return
  }
  func.func @transform_0(%arg0: i32) -> (i32, i32) {
    %c0_i32 = arith.constant 0 : i32
    %c0_i32_0 = arith.constant 0 : i32
    return %arg0, %c0_i32 : i32, i32
  }
  func.func @transform_1(%arg0: i32) -> (i32, i32) {
    %c0_i32 = arith.constant 0 : i32
    %c0_i32_0 = arith.constant 0 : i32
    %c0_i32_1 = arith.constant 0 : i32
    return %c0_i32, %c0_i32_0 : i32, i32
  }
  func.func @transform_2(%arg0: i32) -> (i32, i32) {
    %c0_i32 = arith.constant 0 : i32
    %c0_i32_0 = arith.constant 0 : i32
    return %arg0, %c0_i32 : i32, i32
  }
}

</mosaic_0001>

<bundles_post_ra>
// kernel: fwd.1
= control target key start
LH: loop header
LB: loop body
LE: loop exit
PB: predicated region body
PF: predicated region fallthrough
CT: control target
= control target key end

     0   :  { %7 = vsyncpa [#allocation3], 0  ;;  %s3093_s0 = inlined_call_operand.hbm [shape: f32[32,384], index: 0, kind: input, shape index: {}]   ;;  %s3094_s1 = inlined_call_operand.hbm [shape: f32[384,1152], index: 1, kind: input, shape index: {}]   ;;  %s3095_s2 = inlined_call_operand.hbm [shape: f32[32,384], index: 2, kind: output, shape index: {}]  }
   0x1   :  { %8 = vsyncpa [#allocation6], 0 }
   0x2   :  { %9 = vsyncpa [#allocation4], 0  ;;  %s2845_s9 = smov [#allocation2]  }
   0x3   :  { %s15_s10 = sshll.u32 %s2845_s9, 4  ;;  %s16_s10 = int_to_ptr.vmem [resolvable:$true] %s15_s10 }
   0x4   :  { %s2787_s11 = scalar_lea.vmem %s16_s10, 1536  ;;  %p2792_p1 = scmp.lt.s32.totalorder %s16_s10, %s16_s10 }
   0x5   :  { %p2788_p0 = scmp.ne.s32.totalorder %s16_s10, %s2787_s11  ;;  %p2793_p2 = scmp.lt.s32.totalorder %s2787_s11, %s2787_s11 }
   0x7   :  { %p2794_p3 = por %p2793_p2, %p2792_p1 }
   0x9   :  { %p2795_p4 = pnand %p2794_p3, %p2788_p0 }
   0xb   :  { %2798 = shalt.err (!%p2795_p4)
}
   0xc   :  { %s2846_s12 = smov 384   ;;  %s2847_s13 = smov 24  }
   0xd   :  { %21 = dma.hbm_to_vmem [thread:$0]  %s3093_s0, 1536, %s16_s10, [#allocation3], %s2846_s12, %s2846_s12, %s2847_s13  }
   0xe   :  { %s2848_s16 = smov [#allocation5]  }
   0xf   :  { %s27_s17 = sshll.u32 %s2848_s16, 4  ;;  %s28_s17 = int_to_ptr.vmem [resolvable:$true] %s27_s17 }
  0x10   :  { %s2807_s18 = scalar_lea.vmem %s28_s17, 55296  ;;  %p2812_p6 = scmp.lt.s32.totalorder %s28_s17, %s28_s17 }
  0x11   :  { %p2808_p5 = scmp.ne.s32.totalorder %s28_s17, %s2807_s18  ;;  %p2813_p7 = scmp.lt.s32.totalorder %s2807_s18, %s2807_s18 }
  0x13   :  { %p2814_p8 = por %p2813_p7, %p2812_p6 }
  0x15   :  { %p2815_p9 = pnand %p2814_p8, %p2808_p5 }
  0x17   :  { %2818 = shalt.err (!%p2815_p9)
}
  0x18   :  { %s2849_s19 = smov 1152   ;;  %s2850_s20 = smov 72  }
  0x19   :  { %33 = dma.hbm_to_vmem [thread:$0]  %s3094_s1, 55296, %s28_s17, [#allocation6], %s2849_s19, %s2849_s19, %s2850_s20  }
  0x1a   :  { %2839 = dma.done.wait [#allocation3], 1536  }
  0x1b   :  { %2840 = vsyncadd [#allocation3], 4294965760 }
  0x1c   :  { %2841 = dma.done.wait [#allocation6], 55296  }
  0x1d   :  { %2842 = vsyncadd [#allocation6], 4294912000  ;;  %v2851_v0 = vmov 0.0   ;;  %v188_v1 = vld [vmem:[#allocation5 + $0x440] sm:$0xff]  ;;  %v187_v3 = vld [vmem:[#allocation5 + $0x438] sm:$0xff]  ;;  %vm1441_vm0 = vcmask 130048  }
  0x1e   :  { %637 = vmatprep.mubr.f32.mxu1 %v2851_v0  ;;  %v476_v2 = vld [vmem:[#allocation5 + $0xd40] sm:$0xff]  ;;  %484 = vmatprep.subr.mxu0 %v188_v1  ;;  %v475_v4 = vld [vmem:[#allocation5 + $0xd38] sm:$0xff]  ;;  %v178_v7 = vld [vmem:[#allocation5 + $0x3f0] sm:$0xff]  ;;  %s2852_s0 = smov [#allocation7]  }
  0x1f   :  { %573 = vmatprep.subr.mxu1 %v476_v2  ;;  %v179_v5 = vld [vmem:[#allocation5 + $0x3f8] sm:$0xff]  ;;  %485 = vmatpush1.msra.mxu0 %v187_v3  ;;  %v466_v8 = vld [vmem:[#allocation5 + $0xcf0] sm:$0xff]  ;;  %v169_v11 = vld [vmem:[#allocation5 + $0x3a8] sm:$0xff]  ;;  %s2452_s1 = sshll.u32 %s2852_s0, 4  ;;  %s2453_s1 = int_to_ptr.vmem [resolvable:$true] %s2452_s1 }
  0x20   :  { %v467_v6 = vld [vmem:[#allocation5 + $0xcf8] sm:$0xff]  ;;  %574 = vmatpush1.msra.mxu1 %v475_v4  ;;  %v170_v9 = vld [vmem:[#allocation5 + $0x3b0] sm:$0xff]  ;;  %486 = vmatprep.subr.mxu0 %v179_v5  ;;  %v457_v12 = vld [vmem:[#allocation5 + $0xca8] sm:$0xff]  ;;  %s2819_s23 = scalar_lea.vmem %s2453_s1, 1536  ;;  %p2824_p11 = scmp.lt.s32.totalorder %s2453_s1, %s2453_s1 }
  0x21   :  { %575 = vmatprep.subr.mxu1 %v467_v6  ;;  %v458_v10 = vld [vmem:[#allocation5 + $0xcb0] sm:$0xff]  ;;  %487 = vmatpush1.msra.mxu0 %v178_v7  ;;  %v161_v13 = vld [vmem:[#allocation5 + $0x368] sm:$0xff]  ;;  %v160_v15 = vld [vmem:[#allocation5 + $0x360] sm:$0xff]  ;;  %p2820_p10 = scmp.ne.s32.totalorder %s2453_s1, %s2819_s23  ;;  %p2825_p12 = scmp.lt.s32.totalorder %s2819_s23, %s2819_s23 }
  0x22   :  { %576 = vmatpush1.msra.mxu1 %v466_v8  ;;  %v449_v14 = vld [vmem:[#allocation5 + $0xc68] sm:$0xff]  ;;  %488 = vmatprep.subr.mxu0 %v170_v9  ;;  %v448_v16 = vld [vmem:[#allocation5 + $0xc60] sm:$0xff]  ;;  %v151_v19 = vld [vmem:[#allocation5 + $0x318] sm:$0xff] }
  0x23   :  { %577 = vmatprep.subr.mxu1 %v458_v10  ;;  %489 = vmatpush1.msra.mxu0 %v169_v11  ;;  %v152_v17 = vld [vmem:[#allocation5 + $0x320] sm:$0xff]  ;;  %v439_v20 = vld [vmem:[#allocation5 + $0xc18] sm:$0xff]  ;;  %v142_v23 = vld [vmem:[#allocation5 + $0x2d0] sm:$0xff]  ;;  %p2826_p13 = por %p2825_p12, %p2824_p11 }
  0x24   :  { %578 = vmatpush1.msra.mxu1 %v457_v12  ;;  %v440_v18 = vld [vmem:[#allocation5 + $0xc20] sm:$0xff]  ;;  %490 = vmatprep.subr.mxu0 %v161_v13  ;;  %v143_v21 = vld [vmem:[#allocation5 + $0x2d8] sm:$0xff]  ;;  %v430_v24 = vld [vmem:[#allocation5 + $0xbd0] sm:$0xff] }
  0x25   :  { %579 = vmatprep.subr.mxu1 %v449_v14  ;;  %491 = vmatpush1.msra.mxu0 %v160_v15  ;;  %v431_v22 = vld [vmem:[#allocation5 + $0xbd8] sm:$0xff]  ;;  %v134_v25 = vld [vmem:[#allocation5 + $0x290] sm:$0xff]  ;;  %v133_v27 = vld [vmem:[#allocation5 + $0x288] sm:$0xff]  ;;  %p2827_p0 = pnand %p2826_p13, %p2820_p10 }
  0x26   :  { %580 = vmatpush1.msra.mxu1 %v448_v16  ;;  %492 = vmatprep.subr.mxu0 %v152_v17  ;;  %v422_v26 = vld [vmem:[#allocation5 + $0xb90] sm:$0xff]  ;;  %v421_v28 = vld [vmem:[#allocation5 + $0xb88] sm:$0xff]  ;;  %v124_v31 = vld [vmem:[#allocation5 + $0x240] sm:$0xff] }
  0x27   :  { %581 = vmatprep.subr.mxu1 %v440_v18  ;;  %493 = vmatpush1.msra.mxu0 %v151_v19  ;;  %v125_v29 = vld [vmem:[#allocation5 + $0x248] sm:$0xff]  ;;  %v412_v32 = vld [vmem:[#allocation5 + $0xb40] sm:$0xff]  ;;  %v115_v35 = vld [vmem:[#allocation5 + $0x1f8] sm:$0xff] }
  0x28   :  { %582 = vmatpush1.msra.mxu1 %v439_v20  ;;  %494 = vmatprep.subr.mxu0 %v143_v21  ;;  %v413_v30 = vld [vmem:[#allocation5 + $0xb48] sm:$0xff]  ;;  %v116_v33 = vld [vmem:[#allocation5 + $0x200] sm:$0xff]  ;;  %v403_v36 = vld [vmem:[#allocation5 + $0xaf8] sm:$0xff] }
  0x29   :  { %583 = vmatprep.subr.mxu1 %v431_v22  ;;  %495 = vmatpush1.msra.mxu0 %v142_v23  ;;  %v404_v34 = vld [vmem:[#allocation5 + $0xb00] sm:$0xff]  ;;  %v107_v37 = vld [vmem:[#allocation5 + $0x1b8] sm:$0xff]  ;;  %v106_v39 = vld [vmem:[#allocation5 + $0x1b0] sm:$0xff] }
  0x2a   :  { %584 = vmatpush1.msra.mxu1 %v430_v24  ;;  %496 = vmatprep.subr.mxu0 %v134_v25  ;;  %v395_v38 = vld [vmem:[#allocation5 + $0xab8] sm:$0xff]  ;;  %v394_v40 = vld [vmem:[#allocation5 + $0xab0] sm:$0xff]  ;;  %v97_v43 = vld [vmem:[#allocation5 + $0x168] sm:$0xff] }
  0x2b   :  { %585 = vmatprep.subr.mxu1 %v422_v26  ;;  %497 = vmatpush1.msra.mxu0 %v133_v27  ;;  %v98_v41 = vld [vmem:[#allocation5 + $0x170] sm:$0xff]  ;;  %v385_v44 = vld [vmem:[#allocation5 + $0xa68] sm:$0xff]  ;;  %v88_v47 = vld [vmem:[#allocation5 + $0x120] sm:$0xff] }
  0x2c   :  { %586 = vmatpush1.msra.mxu1 %v421_v28  ;;  %498 = vmatprep.subr.mxu0 %v125_v29  ;;  %v386_v42 = vld [vmem:[#allocation5 + $0xa70] sm:$0xff]  ;;  %v89_v45 = vld [vmem:[#allocation5 + $0x128] sm:$0xff]  ;;  %v376_v48 = vld [vmem:[#allocation5 + $0xa20] sm:$0xff] }
  0x2d   :  { %587 = vmatprep.subr.mxu1 %v413_v30  ;;  %499 = vmatpush1.msra.mxu0 %v124_v31  ;;  %v377_v46 = vld [vmem:[#allocation5 + $0xa28] sm:$0xff]  ;;  %v80_v49 = vld [vmem:[#allocation5 + $0xe0] sm:$0xff]  ;;  %v79_v51 = vld [vmem:[#allocation5 + $0xd8] sm:$0xff] }
  0x2e   :  { %588 = vmatpush1.msra.mxu1 %v412_v32  ;;  %500 = vmatprep.subr.mxu0 %v116_v33  ;;  %v368_v50 = vld [vmem:[#allocation5 + $0x9e0] sm:$0xff]  ;;  %v367_v52 = vld [vmem:[#allocation5 + $0x9d8] sm:$0xff]  ;;  %v70_v55 = vld [vmem:[#allocation5 + $0x90] sm:$0xff] }
  0x2f   :  { %589 = vmatprep.subr.mxu1 %v404_v34  ;;  %501 = vmatpush1.msra.mxu0 %v115_v35  ;;  %v71_v53 = vld [vmem:[#allocation5 + $0x98] sm:$0xff]  ;;  %v358_v56 = vld [vmem:[#allocation5 + $0x990] sm:$0xff]  ;;  %v61_v59 = vld [vmem:[#allocation5 + $0x48] sm:$0xff] }
  0x30   :  { %590 = vmatpush1.msra.mxu1 %v403_v36  ;;  %502 = vmatprep.subr.mxu0 %v107_v37  ;;  %v359_v54 = vld [vmem:[#allocation5 + $0x998] sm:$0xff]  ;;  %v62_v57 = vld [vmem:[#allocation5 + $0x50] sm:$0xff]  ;;  %v349_v60 = vld [vmem:[#allocation5 + $0x948] sm:$0xff] }
  0x31   :  { %591 = vmatprep.subr.mxu1 %v395_v38  ;;  %503 = vmatpush1.msra.mxu0 %v106_v39  ;;  %v350_v58 = vld [vmem:[#allocation5 + $0x950] sm:$0xff]  ;;  %v53_v61 = vld [vmem:[#allocation5 + $0x8] sm:$0xff]  ;;  %v52_v63 = vld [vmem:[#allocation5] sm:$0xff] }
  0x32   :  { %592 = vmatpush1.msra.mxu1 %v394_v40  ;;  %504 = vmatprep.subr.mxu0 %v98_v41  ;;  %v341_v62 = vld [vmem:[#allocation5 + $0x908] sm:$0xff]  ;;  %v340_v1 = vld [vmem:[#allocation5 + $0x900] sm:$0xff]  ;;  %v190_v3 = vld [vmem:[#allocation5 + $0x450] sm:$0xff] }
  0x33   :  { %593 = vmatprep.subr.mxu1 %v386_v42  ;;  %505 = vmatpush1.msra.mxu0 %v97_v43  ;;  %v332_v2 = vld [vmem:[#allocation5 + $0x8c0] sm:$0xff]  ;;  %v331_v4 = vld [vmem:[#allocation5 + $0x8b8] sm:$0xff]  ;;  %v2878_v5 = vld [vmem:[#allocation2 + $0x10] sm:$0xff] }
  0x34   :  { %594 = vmatpush1.msra.mxu1 %v385_v44  ;;  %506 = vmatprep.subr.mxu0 %v89_v45  ;;  %v189_v6 = vld [vmem:[#allocation5 + $0x448] sm:$0xff]  ;;  %v323_v7 = vld [vmem:[#allocation5 + $0x878] sm:$0xff]  ;;  %v322_v9 = vld [vmem:[#allocation5 + $0x870] sm:$0xff] }
  0x35   :  { %595 = vmatprep.subr.mxu1 %v377_v46  ;;  %507 = vmatpush1.msra.mxu0 %v88_v47  ;;  %v181_v8 = vld [vmem:[#allocation5 + $0x408] sm:$0xff]  ;;  %v180_v10 = vld [vmem:[#allocation5 + $0x400] sm:$0xff]  ;;  %v314_v11 = vld [vmem:[#allocation5 + $0x830] sm:$0xff] }
  0x36   :  { %596 = vmatpush1.msra.mxu1 %v376_v48  ;;  %508 = vmatprep.subr.mxu0 %v80_v49  ;;  %v172_v12 = vld [vmem:[#allocation5 + $0x3c0] sm:$0xff]  ;;  %v313_v13 = vld [vmem:[#allocation5 + $0x828] sm:$0xff]  ;;  %v171_v14 = vld [vmem:[#allocation5 + $0x3b8] sm:$0xff] }
  0x37   :  { %597 = vmatprep.subr.mxu1 %v368_v50  ;;  %509 = vmatpush1.msra.mxu0 %v79_v51  ;;  %v305_v15 = vld [vmem:[#allocation5 + $0x7e8] sm:$0xff]  ;;  %v163_v16 = vld [vmem:[#allocation5 + $0x378] sm:$0xff]  ;;  %v304_v17 = vld [vmem:[#allocation5 + $0x7e0] sm:$0xff] }
  0x38   :  { %598 = vmatpush1.msra.mxu1 %v367_v52  ;;  %510 = vmatprep.subr.mxu0 %v71_v53  ;;  %v162_v18 = vld [vmem:[#allocation5 + $0x370] sm:$0xff]  ;;  %v296_v19 = vld [vmem:[#allocation5 + $0x7a0] sm:$0xff]  ;;  %v295_v21 = vld [vmem:[#allocation5 + $0x798] sm:$0xff] }
  0x39   :  { %599 = vmatprep.subr.mxu1 %v359_v54  ;;  %511 = vmatpush1.msra.mxu0 %v70_v55  ;;  %v154_v20 = vld [vmem:[#allocation5 + $0x330] sm:$0xff]  ;;  %v153_v22 = vld [vmem:[#allocation5 + $0x328] sm:$0xff]  ;;  %v287_v23 = vld [vmem:[#allocation5 + $0x758] sm:$0xff] }
  0x3a   :  { %600 = vmatpush1.msra.mxu1 %v358_v56  ;;  %512 = vmatprep.subr.mxu0 %v62_v57  ;;  %v145_v24 = vld [vmem:[#allocation5 + $0x2e8] sm:$0xff]  ;;  %v286_v25 = vld [vmem:[#allocation5 + $0x750] sm:$0xff]  ;;  %v144_v26 = vld [vmem:[#allocation5 + $0x2e0] sm:$0xff] }
  0x3b   :  { %601 = vmatprep.subr.mxu1 %v350_v58  ;;  %513 = vmatpush1.msra.mxu0 %v61_v59  ;;  %v278_v27 = vld [vmem:[#allocation5 + $0x710] sm:$0xff]  ;;  %v136_v28 = vld [vmem:[#allocation5 + $0x2a0] sm:$0xff]  ;;  %v277_v29 = vld [vmem:[#allocation5 + $0x708] sm:$0xff] }
  0x3c   :  { %602 = vmatpush1.msra.mxu1 %v349_v60  ;;  %514 = vmatprep.subr.mxu0 %v53_v61  ;;  %v135_v30 = vld [vmem:[#allocation5 + $0x298] sm:$0xff]  ;;  %v269_v31 = vld [vmem:[#allocation5 + $0x6c8] sm:$0xff]  ;;  %v268_v33 = vld [vmem:[#allocation5 + $0x6c0] sm:$0xff] }
  0x3d   :  { %603 = vmatprep.subr.mxu1 %v341_v62  ;;  %515 = vmatpush1.msra.mxu0 %v52_v63  ;;  %v127_v32 = vld [vmem:[#allocation5 + $0x258] sm:$0xff]  ;;  %v126_v34 = vld [vmem:[#allocation5 + $0x250] sm:$0xff]  ;;  %v260_v35 = vld [vmem:[#allocation5 + $0x680] sm:$0xff] }
  0x3e   :  { %604 = vmatpush1.msra.mxu1 %v340_v1  ;;  %516 = vmatprep.subr.mxu0 %v332_v2  ;;  %v118_v36 = vld [vmem:[#allocation5 + $0x210] sm:$0xff]  ;;  %v259_v37 = vld [vmem:[#allocation5 + $0x678] sm:$0xff]  ;;  %v117_v38 = vld [vmem:[#allocation5 + $0x208] sm:$0xff] }
  0x3f   :  { %662 = vmatprep.subr.mxu1 %v190_v3  ;;  %517 = vmatpush2.msra.mxu0 %v331_v4  ;;  %v251_v39 = vld [vmem:[#allocation5 + $0x638] sm:$0xff]  ;;  %v109_v40 = vld [vmem:[#allocation5 + $0x1c8] sm:$0xff]  ;;  %v250_v41 = vld [vmem:[#allocation5 + $0x630] sm:$0xff] }
  0x40   :  { %638 = vmatmul.mubr.f32.vlgmr.msra.gmra.mxu1 %v2878_v5  ;;  %518 = vmatprep.subr.mxu0 %v323_v7  ;;  %v108_v42 = vld [vmem:[#allocation5 + $0x1c0] sm:$0xff]  ;;  %v242_v43 = vld [vmem:[#allocation5 + $0x5f0] sm:$0xff]  ;;  %v241_v45 = vld [vmem:[#allocation5 + $0x5e8] sm:$0xff] }
  0x41   :  { %663 = vmatpush1.msra.mxu1 %v189_v6  ;;  %519 = vmatpush2.msra.mxu0 %v322_v9  ;;  %v100_v44 = vld [vmem:[#allocation5 + $0x180] sm:$0xff]  ;;  %v99_v46 = vld [vmem:[#allocation5 + $0x178] sm:$0xff]  ;;  %v233_v47 = vld [vmem:[#allocation5 + $0x5a8] sm:$0xff] }
  0x42   :  { %664 = vmatprep.subr.mxu1 %v181_v8  ;;  %520 = vmatprep.subr.mxu0 %v314_v11  ;;  %v91_v48 = vld [vmem:[#allocation5 + $0x138] sm:$0xff]  ;;  %v232_v49 = vld [vmem:[#allocation5 + $0x5a0] sm:$0xff]  ;;  %v90_v50 = vld [vmem:[#allocation5 + $0x130] sm:$0xff] }
  0x43   :  { %665 = vmatpush1.msra.mxu1 %v180_v10  ;;  %521 = vmatpush2.msra.mxu0 %v313_v13  ;;  %v224_v51 = vld [vmem:[#allocation5 + $0x560] sm:$0xff]  ;;  %v82_v52 = vld [vmem:[#allocation5 + $0xf0] sm:$0xff]  ;;  %v223_v53 = vld [vmem:[#allocation5 + $0x558] sm:$0xff] }
  0x44   :  { %666 = vmatprep.subr.mxu1 %v172_v12  ;;  %522 = vmatprep.subr.mxu0 %v305_v15  ;;  %v81_v54 = vld [vmem:[#allocation5 + $0xe8] sm:$0xff]  ;;  %v215_v55 = vld [vmem:[#allocation5 + $0x518] sm:$0xff]  ;;  %v214_v57 = vld [vmem:[#allocation5 + $0x510] sm:$0xff] }
  0x45   :  { %667 = vmatpush1.msra.mxu1 %v171_v14  ;;  %523 = vmatpush2.msra.mxu0 %v304_v17  ;;  %v73_v56 = vld [vmem:[#allocation5 + $0xa8] sm:$0xff]  ;;  %v72_v58 = vld [vmem:[#allocation5 + $0xa0] sm:$0xff]  ;;  %v206_v59 = vld [vmem:[#allocation5 + $0x4d0] sm:$0xff] }
  0x46   :  { %668 = vmatprep.subr.mxu1 %v163_v16  ;;  %524 = vmatprep.subr.mxu0 %v296_v19  ;;  %v64_v60 = vld [vmem:[#allocation5 + $0x60] sm:$0xff]  ;;  %v205_v61 = vld [vmem:[#allocation5 + $0x4c8] sm:$0xff]  ;;  %v63_v62 = vld [vmem:[#allocation5 + $0x58] sm:$0xff] }
  0x47   :  { %669 = vmatpush1.msra.mxu1 %v162_v18  ;;  %525 = vmatpush2.msra.mxu0 %v295_v21  ;;  %v197_v63 = vld [vmem:[#allocation5 + $0x488] sm:$0xff]  ;;  %v55_v1 = vld [vmem:[#allocation5 + $0x18] sm:$0xff]  ;;  %v196_v2 = vld [vmem:[#allocation5 + $0x480] sm:$0xff] }
  0x48   :  { %670 = vmatprep.subr.mxu1 %v154_v20  ;;  %526 = vmatprep.subr.mxu0 %v287_v23  ;;  %v2881_v3 = vld [vmem:[#allocation2 + $0x8] sm:$0xff]  ;;  %v54_v4 = vld [vmem:[#allocation5 + $0x10] sm:$0xff]  ;;  %v2883_v6 = vld [vmem:[#allocation2] sm:$0xff] }
  0x49   :  { %671 = vmatpush1.msra.mxu1 %v153_v22  ;;  %527 = vmatpush2.msra.mxu0 %v286_v25  ;;  %v334_v7 = vld [vmem:[#allocation5 + $0x8d0] sm:$0xff]  ;;  %v333_v9 = vld [vmem:[#allocation5 + $0x8c8] sm:$0xff]  ;;  %v324_v13 = vld [vmem:[#allocation5 + $0x880] sm:$0xff] }
  0x4a   :  { %672 = vmatprep.subr.mxu1 %v145_v24  ;;  %528 = vmatprep.subr.mxu0 %v278_v27  ;;  %v478_v8 = vld [vmem:[#allocation5 + $0xd50] sm:$0xff]  ;;  %v477_v10 = vld [vmem:[#allocation5 + $0xd48] sm:$0xff]  ;;  %v468_v14 = vld [vmem:[#allocation5 + $0xd00] sm:$0xff] }
  0x4b   :  { %673 = vmatpush1.msra.mxu1 %v144_v26  ;;  %529 = vmatpush2.msra.mxu0 %v277_v29  ;;  %v325_v11 = vld [vmem:[#allocation5 + $0x888] sm:$0xff]  ;;  %v316_v15 = vld [vmem:[#allocation5 + $0x840] sm:$0xff]  ;;  %v315_v17 = vld [vmem:[#allocation5 + $0x838] sm:$0xff] }
  0x4c   :  { %674 = vmatprep.subr.mxu1 %v136_v28  ;;  %530 = vmatprep.subr.mxu0 %v269_v31  ;;  %v469_v12 = vld [vmem:[#allocation5 + $0xd08] sm:$0xff]  ;;  %v460_v16 = vld [vmem:[#allocation5 + $0xcc0] sm:$0xff]  ;;  %v459_v18 = vld [vmem:[#allocation5 + $0xcb8] sm:$0xff] }
  0x4d   :  { %675 = vmatpush1.msra.mxu1 %v135_v30  ;;  %531 = vmatpush2.msra.mxu0 %v268_v33  ;;  %v307_v19 = vld [vmem:[#allocation5 + $0x7f8] sm:$0xff]  ;;  %v306_v21 = vld [vmem:[#allocation5 + $0x7f0] sm:$0xff]  ;;  %v297_v25 = vld [vmem:[#allocation5 + $0x7a8] sm:$0xff] }
  0x4e   :  { %676 = vmatprep.subr.mxu1 %v127_v32  ;;  %532 = vmatprep.subr.mxu0 %v260_v35  ;;  %v451_v20 = vld [vmem:[#allocation5 + $0xc78] sm:$0xff]  ;;  %v450_v22 = vld [vmem:[#allocation5 + $0xc70] sm:$0xff]  ;;  %v441_v26 = vld [vmem:[#allocation5 + $0xc28] sm:$0xff] }
  0x4f   :  { %677 = vmatpush1.msra.mxu1 %v126_v34  ;;  %533 = vmatpush2.msra.mxu0 %v259_v37  ;;  %v298_v23 = vld [vmem:[#allocation5 + $0x7b0] sm:$0xff]  ;;  %v289_v27 = vld [vmem:[#allocation5 + $0x768] sm:$0xff]  ;;  %v288_v29 = vld [vmem:[#allocation5 + $0x760] sm:$0xff] }
  0x50   :  { %678 = vmatprep.subr.mxu1 %v118_v36  ;;  %534 = vmatprep.subr.mxu0 %v251_v39  ;;  %v442_v24 = vld [vmem:[#allocation5 + $0xc30] sm:$0xff]  ;;  %v433_v28 = vld [vmem:[#allocation5 + $0xbe8] sm:$0xff]  ;;  %v432_v30 = vld [vmem:[#allocation5 + $0xbe0] sm:$0xff] }
  0x51   :  { %679 = vmatpush1.msra.mxu1 %v117_v38  ;;  %535 = vmatpush2.msra.mxu0 %v250_v41  ;;  %v280_v31 = vld [vmem:[#allocation5 + $0x720] sm:$0xff]  ;;  %v279_v33 = vld [vmem:[#allocation5 + $0x718] sm:$0xff]  ;;  %v270_v37 = vld [vmem:[#allocation5 + $0x6d0] sm:$0xff] }
  0x52   :  { %680 = vmatprep.subr.mxu1 %v109_v40  ;;  %536 = vmatprep.subr.mxu0 %v242_v43  ;;  %v424_v32 = vld [vmem:[#allocation5 + $0xba0] sm:$0xff]  ;;  %v423_v34 = vld [vmem:[#allocation5 + $0xb98] sm:$0xff]  ;;  %v414_v38 = vld [vmem:[#allocation5 + $0xb50] sm:$0xff] }
  0x53   :  { %681 = vmatpush1.msra.mxu1 %v108_v42  ;;  %537 = vmatpush2.msra.mxu0 %v241_v45  ;;  %v271_v35 = vld [vmem:[#allocation5 + $0x6d8] sm:$0xff]  ;;  %v262_v39 = vld [vmem:[#allocation5 + $0x690] sm:$0xff]  ;;  %v261_v41 = vld [vmem:[#allocation5 + $0x688] sm:$0xff] }
  0x54   :  { %682 = vmatprep.subr.mxu1 %v100_v44  ;;  %538 = vmatprep.subr.mxu0 %v233_v47  ;;  %v415_v36 = vld [vmem:[#allocation5 + $0xb58] sm:$0xff]  ;;  %v406_v40 = vld [vmem:[#allocation5 + $0xb10] sm:$0xff]  ;;  %v405_v42 = vld [vmem:[#allocation5 + $0xb08] sm:$0xff] }
  0x55   :  { %683 = vmatpush1.msra.mxu1 %v99_v46  ;;  %539 = vmatpush2.msra.mxu0 %v232_v49  ;;  %v2887_v43 = vld [vmem:[#allocation2 + $0x20] sm:$0xff]  ;;  %v253_v44 = vld [vmem:[#allocation5 + $0x648] sm:$0xff]  ;;  %v2889_v46 = vld [vmem:[#allocation2 + $0x18] sm:$0xff] }
  0x56   :  { %684 = vmatprep.subr.mxu1 %v91_v48  ;;  %540 = vmatprep.subr.mxu0 %v224_v51  ;;  %v397_v45 = vld [vmem:[#allocation5 + $0xac8] sm:$0xff]  ;;  %v396_v48 = vld [vmem:[#allocation5 + $0xac0] sm:$0xff] }
  0x57   :  { %685 = vmatpush1.msra.mxu1 %v90_v50  ;;  %541 = vmatpush2.msra.mxu0 %v223_v53  ;;  %v2892_v47 = vld [vmem:[#allocation2 + $0x28] sm:$0xff]  ;;  %v252_v49 = vld [vmem:[#allocation5 + $0x640] sm:$0xff]  ;;  %v243_v53 = vld [vmem:[#allocation5 + $0x5f8] sm:$0xff] }
  0x58   :  { %686 = vmatprep.subr.mxu1 %v82_v52  ;;  %542 = vmatprep.subr.mxu0 %v215_v55  ;;  %v388_v50 = vld [vmem:[#allocation5 + $0xa80] sm:$0xff]  ;;  %v387_v52 = vld [vmem:[#allocation5 + $0xa78] sm:$0xff] }
  0x59   :  { %687 = vmatpush1.msra.mxu1 %v81_v54  ;;  %543 = vmatpush2.msra.mxu0 %v214_v57  ;;  %v244_v51 = vld [vmem:[#allocation5 + $0x600] sm:$0xff]  ;;  %v2897_v54 = vld [vmem:[#allocation2 + $0x38] sm:$0xff]  ;;  %v2899_v57 = vld [vmem:[#allocation2 + $0x30] sm:$0xff] }
  0x5a   :  { %688 = vmatprep.subr.mxu1 %v73_v56  ;;  %544 = vmatprep.subr.mxu0 %v206_v59  ;;  %v235_v55 = vld [vmem:[#allocation5 + $0x5b8] sm:$0xff]  ;;  %v378_v59 = vld [vmem:[#allocation5 + $0xa30] sm:$0xff] }
  0x5b   :  { %689 = vmatpush1.msra.mxu1 %v72_v58  ;;  %545 = vmatpush2.msra.mxu0 %v205_v61  ;;  %v379_v56 = vld [vmem:[#allocation5 + $0xa38] sm:$0xff]  ;;  %v2902_v58 = vld [vmem:[#allocation2 + $0x40] sm:$0xff]  ;;  %v370_v61 = vld [vmem:[#allocation5 + $0x9f0] sm:$0xff] }
  0x5c   :  { %690 = vmatprep.subr.mxu1 %v64_v60  ;;  %546 = vmatprep.subr.mxu0 %v197_v63  ;;  %v234_v60 = vld [vmem:[#allocation5 + $0x5b0] sm:$0xff]  ;;  %v369_v63 = vld [vmem:[#allocation5 + $0x9e8] sm:$0xff] }
  0x5d   :  { %691 = vmatpush1.msra.mxu1 %v63_v62  ;;  %547 = vmatpush2.msra.mxu0 %v196_v2  ;;  %v226_v62 = vld [vmem:[#allocation5 + $0x570] sm:$0xff] }
  0x5e   :  { %692 = vmatprep.subr.mxu1 %v55_v1  ;;  %548 = vmatprep.mubr.f32.mxu0 %v2881_v3  ;;  %v225_v1 = vld [vmem:[#allocation5 + $0x568] sm:$0xff]  ;;  %v2907_v2 = vld [vmem:[#allocation2 + $0x50] sm:$0xff] }
  0x5f   :  { %693 = vmatpush1.msra.mxu1 %v54_v4  ;;  %549 = vmatmul.mubr.f32.vlgmr.msra.gmra.mxu0 %v2883_v6  ;;  %v217_v4 = vld [vmem:[#allocation5 + $0x528] sm:$0xff] }
  0x60   :  { %694 = vmatprep.subr.mxu1 %v334_v7  ;;  %751 = vmatprep.subr.mxu0 %v478_v8  ;;  %v361_v7 = vld [vmem:[#allocation5 + $0x9a8] sm:$0xff] }
  0x61   :  { %695 = vmatpush2.msra.mxu1 %v333_v9  ;;  %752 = vmatpush1.msra.mxu0 %v477_v10  ;;  %v2909_v8 = vld [vmem:[#allocation2 + $0x48] sm:$0xff]  ;;  %v2912_v9 = vld [vmem:[#allocation2 + $0x58] sm:$0xff]  ;;  %v360_v10 = vld [vmem:[#allocation5 + $0x9a0] sm:$0xff] }
  0x62   :  { %696 = vmatprep.subr.mxu1 %v325_v11  ;;  %753 = vmatprep.subr.mxu0 %v469_v12  ;;  %v216_v11 = vld [vmem:[#allocation5 + $0x520] sm:$0xff] }
  0x63   :  { %697 = vmatpush2.msra.mxu1 %v324_v13  ;;  %754 = vmatpush1.msra.mxu0 %v468_v14  ;;  %v352_v12 = vld [vmem:[#allocation5 + $0x960] sm:$0xff]  ;;  %v351_v14 = vld [vmem:[#allocation5 + $0x958] sm:$0xff] }
  0x64   :  { %698 = vmatprep.subr.mxu1 %v316_v15  ;;  %755 = vmatprep.subr.mxu0 %v460_v16  ;;  %v208_v13 = vld [vmem:[#allocation5 + $0x4e0] sm:$0xff]  ;;  %v207_v15 = vld [vmem:[#allocation5 + $0x4d8] sm:$0xff] }
  0x65   :  { %699 = vmatpush2.msra.mxu1 %v315_v17  ;;  %756 = vmatpush1.msra.mxu0 %v459_v18  ;;  %v343_v16 = vld [vmem:[#allocation5 + $0x918] sm:$0xff]  ;;  %v198_v18 = vld [vmem:[#allocation5 + $0x490] sm:$0xff] }
  0x66   :  { %700 = vmatprep.subr.mxu1 %v307_v19  ;;  %757 = vmatprep.subr.mxu0 %v451_v20  ;;  %v199_v17 = vld [vmem:[#allocation5 + $0x498] sm:$0xff]  ;;  %v342_v19 = vld [vmem:[#allocation5 + $0x910] sm:$0xff]  ;;  %v192_v20 = vld [vmem:[#allocation5 + $0x460] sm:$0xff] }
  0x67   :  { %701 = vmatpush2.msra.mxu1 %v306_v21  ;;  %758 = vmatpush1.msra.mxu0 %v450_v22  ;;  %v480_v21 = vld [vmem:[#allocation5 + $0xd60] sm:$0xff]  ;;  %v191_v22 = vld [vmem:[#allocation5 + $0x458] sm:$0xff] }
  0x68   :  { %702 = vmatprep.subr.mxu1 %v298_v23  ;;  %759 = vmatprep.subr.mxu0 %v442_v24  ;;  %v479_v23 = vld [vmem:[#allocation5 + $0xd58] sm:$0xff] }
  0x69   :  { %703 = vmatpush2.msra.mxu1 %v297_v25  ;;  %760 = vmatpush1.msra.mxu0 %v441_v26  ;;  %v183_v24 = vld [vmem:[#allocation5 + $0x418] sm:$0xff]  ;;  %v182_v26 = vld [vmem:[#allocation5 + $0x410] sm:$0xff] }
  0x6a   :  { %704 = vmatprep.subr.mxu1 %v289_v27  ;;  %761 = vmatprep.subr.mxu0 %v433_v28  ;;  %v471_v25 = vld [vmem:[#allocation5 + $0xd18] sm:$0xff]  ;;  %v470_v27 = vld [vmem:[#allocation5 + $0xd10] sm:$0xff] }
  0x6b   :  { %705 = vmatpush2.msra.mxu1 %v288_v29  ;;  %762 = vmatpush1.msra.mxu0 %v432_v30  ;;  %v174_v28 = vld [vmem:[#allocation5 + $0x3d0] sm:$0xff]  ;;  %v173_v30 = vld [vmem:[#allocation5 + $0x3c8] sm:$0xff] }
  0x6c   :  { %706 = vmatprep.subr.mxu1 %v280_v31  ;;  %763 = vmatprep.subr.mxu0 %v424_v32  ;;  %v462_v29 = vld [vmem:[#allocation5 + $0xcd0] sm:$0xff]  ;;  %v461_v31 = vld [vmem:[#allocation5 + $0xcc8] sm:$0xff] }
  0x6d   :  { %707 = vmatpush2.msra.mxu1 %v279_v33  ;;  %764 = vmatpush1.msra.mxu0 %v423_v34  ;;  %v165_v32 = vld [vmem:[#allocation5 + $0x388] sm:$0xff]  ;;  %v164_v34 = vld [vmem:[#allocation5 + $0x380] sm:$0xff] }
  0x6e   :  { %708 = vmatprep.subr.mxu1 %v271_v35  ;;  %765 = vmatprep.subr.mxu0 %v415_v36  ;;  %v453_v33 = vld [vmem:[#allocation5 + $0xc88] sm:$0xff]  ;;  %v452_v35 = vld [vmem:[#allocation5 + $0xc80] sm:$0xff] }
  0x6f   :  { %709 = vmatpush2.msra.mxu1 %v270_v37  ;;  %766 = vmatpush1.msra.mxu0 %v414_v38  ;;  %v156_v36 = vld [vmem:[#allocation5 + $0x340] sm:$0xff]  ;;  %v155_v38 = vld [vmem:[#allocation5 + $0x338] sm:$0xff] }
  0x70   :  { %710 = vmatprep.subr.mxu1 %v262_v39  ;;  %767 = vmatprep.subr.mxu0 %v406_v40  ;;  %v444_v37 = vld [vmem:[#allocation5 + $0xc40] sm:$0xff]  ;;  %v443_v39 = vld [vmem:[#allocation5 + $0xc38] sm:$0xff] }
  0x71   :  { %711 = vmatpush2.msra.mxu1 %v261_v41  ;;  %768 = vmatpush1.msra.mxu0 %v405_v42  ;;  %v147_v40 = vld [vmem:[#allocation5 + $0x2f8] sm:$0xff]  ;;  %v146_v42 = vld [vmem:[#allocation5 + $0x2f0] sm:$0xff] }
  0x72   :  { %554 = vmatprep.mubr.f32.mxu0 %v2887_v43  ;;  %643 = vmatprep.mubr.f32.mxu1 %v2851_v0  ;;  %v435_v41 = vld [vmem:[#allocation5 + $0xbf8] sm:$0xff] }
  0x73   :  { %712 = vmatprep.subr.mxu1 %v253_v44  ;;  %769 = vmatprep.subr.mxu0 %v397_v45  ;;  %v434_v44 = vld [vmem:[#allocation5 + $0xbf0] sm:$0xff] }
  0x74   :  { %555 = vmatmul.mubr.f32.gmra.mxu0 %v2889_v46  ;;  %644 = vmatmul.mubr.f32.gmra.mxu1 %v2892_v47  ;;  %v138_v45 = vld [vmem:[#allocation5 + $0x2b0] sm:$0xff] }
  0x75   :  { %770 = vmatpush1.msra.mxu0 %v396_v48  ;;  %713 = vmatpush2.msra.mxu1 %v252_v49  ;;  %v426_v48 = vld [vmem:[#allocation5 + $0xbb0] sm:$0xff]  ;;  %v137_v49 = vld [vmem:[#allocation5 + $0x2a8] sm:$0xff] }
  0x76   :  { %771 = vmatprep.subr.mxu0 %v388_v50  ;;  %714 = vmatprep.subr.mxu1 %v244_v51  ;;  %v425_v50 = vld [vmem:[#allocation5 + $0xba8] sm:$0xff] }
  0x77   :  { %772 = vmatpush1.msra.mxu0 %v387_v52  ;;  %715 = vmatpush2.msra.mxu1 %v243_v53  ;;  %v129_v51 = vld [vmem:[#allocation5 + $0x268] sm:$0xff]  ;;  %v128_v53 = vld [vmem:[#allocation5 + $0x260] sm:$0xff] }
  0x78   :  { %560 = vmatprep.mubr.f32.mxu0 %v2897_v54  ;;  %649 = vmatprep.mubr.f32.mxu1 %v2851_v0  ;;  %v417_v52 = vld [vmem:[#allocation5 + $0xb68] sm:$0xff] }
  0x79   :  { %716 = vmatprep.subr.mxu1 %v235_v55  ;;  %773 = vmatprep.subr.mxu0 %v379_v56  ;;  %v416_v55 = vld [vmem:[#allocation5 + $0xb60] sm:$0xff] }
  0x7a   :  { %561 = vmatmul.mubr.f32.gmra.mxu0 %v2899_v57  ;;  %650 = vmatmul.mubr.f32.gmra.mxu1 %v2902_v58  ;;  %v120_v56 = vld [vmem:[#allocation5 + $0x220] sm:$0xff] }
  0x7b   :  { %774 = vmatpush1.msra.mxu0 %v378_v59  ;;  %717 = vmatpush2.msra.mxu1 %v234_v60  ;;  %v408_v59 = vld [vmem:[#allocation5 + $0xb20] sm:$0xff]  ;;  %v119_v60 = vld [vmem:[#allocation5 + $0x218] sm:$0xff] }
  0x7c   :  { %775 = vmatprep.subr.mxu0 %v370_v61  ;;  %718 = vmatprep.subr.mxu1 %v226_v62  ;;  %v407_v61 = vld [vmem:[#allocation5 + $0xb18] sm:$0xff] }
  0x7d   :  { %776 = vmatpush1.msra.mxu0 %v369_v63  ;;  %719 = vmatpush2.msra.mxu1 %v225_v1  ;;  %v111_v62 = vld [vmem:[#allocation5 + $0x1d8] sm:$0xff]  ;;  %v110_v1 = vld [vmem:[#allocation5 + $0x1d0] sm:$0xff] }
  0x7e   :  { %566 = vmatprep.mubr.f32.mxu0 %v2907_v2  ;;  %655 = vmatprep.mubr.f32.mxu1 %v2851_v0  ;;  %v399_v63 = vld [vmem:[#allocation5 + $0xad8] sm:$0xff] }
  0x7f   :  { %720 = vmatprep.subr.mxu1 %v217_v4  ;;  %777 = vmatprep.subr.mxu0 %v361_v7  ;;  %v398_v4 = vld [vmem:[#allocation5 + $0xad0] sm:$0xff] }
  0x80   :  { %567 = vmatmul.mubr.f32.gmra.mxu0 %v2909_v8  ;;  %656 = vmatmul.mubr.f32.gmra.mxu1 %v2912_v9  ;;  %v102_v7 = vld [vmem:[#allocation5 + $0x190] sm:$0xff] }
  0x81   :  { %778 = vmatpush1.msra.mxu0 %v360_v10  ;;  %721 = vmatpush2.msra.mxu1 %v216_v11  ;;  %v390_v10 = vld [vmem:[#allocation5 + $0xa90] sm:$0xff]  ;;  %v101_v11 = vld [vmem:[#allocation5 + $0x188] sm:$0xff] }
  0x82   :  { %779 = vmatprep.subr.mxu0 %v352_v12  ;;  %722 = vmatprep.subr.mxu1 %v208_v13  ;;  %v389_v12 = vld [vmem:[#allocation5 + $0xa88] sm:$0xff] }
  0x83   :  { %780 = vmatpush1.msra.mxu0 %v351_v14  ;;  %723 = vmatpush2.msra.mxu1 %v207_v15  ;;  %v93_v13 = vld [vmem:[#allocation5 + $0x148] sm:$0xff]  ;;  %v92_v15 = vld [vmem:[#allocation5 + $0x140] sm:$0xff] }
  0x84   :  { %781 = vmatprep.subr.mxu0 %v343_v16  ;;  %724 = vmatprep.subr.mxu1 %v199_v17  ;;  %v381_v14 = vld [vmem:[#allocation5 + $0xa48] sm:$0xff]  ;;  %v380_v16 = vld [vmem:[#allocation5 + $0xa40] sm:$0xff] }
  0x85   :  { %726 = vmatprep.mubr.f32.mxu1 %v2881_v3  ;;  %725 = vmatpush2.msra.mxu1 %v198_v18  ;;  %v84_v17 = vld [vmem:[#allocation5 + $0x100] sm:$0xff] }
  0x86   :  { %782 = vmatpush1.msra.mxu0 %v342_v19  ;;  %815 = vmatprep.mubr.f32.mxu0 %v2851_v0  ;;  %v372_v18 = vld [vmem:[#allocation5 + $0xa00] sm:$0xff]  ;;  %v83_v19 = vld [vmem:[#allocation5 + $0xf8] sm:$0xff] }
  0x87   :  { %727 = vmatmul.mubr.f32.vlgmr.msra.gmra.mxu1 %v2883_v6  ;;  %816 = vmatmul.mubr.f32.vlgmr.msra.gmra.mxu0 %v2878_v5 }
  0x88   :  { %840 = vmatprep.subr.mxu0 %v192_v20  ;;  %929 = vmatprep.subr.mxu1 %v480_v21  ;;  %v371_v20 = vld [vmem:[#allocation5 + $0x9f8] sm:$0xff] }
  0x89   :  { %841 = vmatpush1.msra.mxu0 %v191_v22  ;;  %930 = vmatpush1.msra.mxu1 %v479_v23  ;;  %v75_v21 = vld [vmem:[#allocation5 + $0xb8] sm:$0xff]  ;;  %v74_v23 = vld [vmem:[#allocation5 + $0xb0] sm:$0xff] }
  0x8a   :  { %842 = vmatprep.subr.mxu0 %v183_v24  ;;  %931 = vmatprep.subr.mxu1 %v471_v25  ;;  %v363_v22 = vld [vmem:[#allocation5 + $0x9b8] sm:$0xff]  ;;  %v362_v24 = vld [vmem:[#allocation5 + $0x9b0] sm:$0xff] }
  0x8b   :  { %732 = vmatprep.mubr.f32.mxu1 %v2887_v43  ;;  %821 = vmatprep.mubr.f32.mxu0 %v2851_v0  ;;  %v66_v25 = vld [vmem:[#allocation5 + $0x70] sm:$0xff] }
  0x8c   :  { %843 = vmatpush1.msra.mxu0 %v182_v26  ;;  %932 = vmatpush1.msra.mxu1 %v470_v27  ;;  %v354_v26 = vld [vmem:[#allocation5 + $0x970] sm:$0xff]  ;;  %v65_v27 = vld [vmem:[#allocation5 + $0x68] sm:$0xff] }
  0x8d   :  { %822 = vmatmul.mubr.f32.gmra.mxu0 %v2892_v47  ;;  %733 = vmatmul.mubr.f32.gmra.mxu1 %v2889_v46 }
  0x8e   :  { %844 = vmatprep.subr.mxu0 %v174_v28  ;;  %933 = vmatprep.subr.mxu1 %v462_v29  ;;  %v353_v28 = vld [vmem:[#allocation5 + $0x968] sm:$0xff] }
  0x8f   :  { %845 = vmatpush1.msra.mxu0 %v173_v30  ;;  %934 = vmatpush1.msra.mxu1 %v461_v31  ;;  %v57_v29 = vld [vmem:[#allocation5 + $0x28] sm:$0xff]  ;;  %v56_v31 = vld [vmem:[#allocation5 + $0x20] sm:$0xff] }
  0x90   :  { %846 = vmatprep.subr.mxu0 %v165_v32  ;;  %935 = vmatprep.subr.mxu1 %v453_v33  ;;  %v345_v30 = vld [vmem:[#allocation5 + $0x928] sm:$0xff]  ;;  %v344_v32 = vld [vmem:[#allocation5 + $0x920] sm:$0xff] }
  0x91   :  { %738 = vmatprep.mubr.f32.mxu1 %v2897_v54  ;;  %827 = vmatprep.mubr.f32.mxu0 %v2851_v0  ;;  %v336_v33 = vld [vmem:[#allocation5 + $0x8e0] sm:$0xff] }
  0x92   :  { %847 = vmatpush1.msra.mxu0 %v164_v34  ;;  %936 = vmatpush1.msra.mxu1 %v452_v35  ;;  %v194_v34 = vld [vmem:[#allocation5 + $0x470] sm:$0xff]  ;;  %v335_v35 = vld [vmem:[#allocation5 + $0x8d8] sm:$0xff] }
  0x93   :  { %828 = vmatmul.mubr.f32.gmra.mxu0 %v2902_v58  ;;  %739 = vmatmul.mubr.f32.gmra.mxu1 %v2899_v57 }
  0x94   :  { %848 = vmatprep.subr.mxu0 %v156_v36  ;;  %937 = vmatprep.subr.mxu1 %v444_v37  ;;  %v193_v36 = vld [vmem:[#allocation5 + $0x468] sm:$0xff]  ;;  %v327_v37 = vld [vmem:[#allocation5 + $0x898] sm:$0xff] }
  0x95   :  { %849 = vmatpush1.msra.mxu0 %v155_v38  ;;  %938 = vmatpush1.msra.mxu1 %v443_v39  ;;  %v185_v38 = vld [vmem:[#allocation5 + $0x428] sm:$0xff]  ;;  %v326_v39 = vld [vmem:[#allocation5 + $0x890] sm:$0xff] }
  0x96   :  { %850 = vmatprep.subr.mxu0 %v147_v40  ;;  %939 = vmatprep.subr.mxu1 %v435_v41  ;;  %v184_v40 = vld [vmem:[#allocation5 + $0x420] sm:$0xff]  ;;  %v318_v41 = vld [vmem:[#allocation5 + $0x850] sm:$0xff] }
  0x97   :  { %744 = vmatprep.mubr.f32.mxu1 %v2907_v2  ;;  %833 = vmatprep.mubr.f32.mxu0 %v2851_v0 }
  0x98   :  { %851 = vmatpush1.msra.mxu0 %v146_v42  ;;  %940 = vmatpush1.msra.mxu1 %v434_v44  ;;  %v176_v42 = vld [vmem:[#allocation5 + $0x3e0] sm:$0xff]  ;;  %v317_v44 = vld [vmem:[#allocation5 + $0x848] sm:$0xff] }
  0x99   :  { %834 = vmatmul.mubr.f32.gmra.mxu0 %v2912_v9  ;;  %745 = vmatmul.mubr.f32.gmra.mxu1 %v2909_v8 }
  0x9a   :  { %852 = vmatprep.subr.mxu0 %v138_v45  ;;  %941 = vmatprep.subr.mxu1 %v426_v48  ;;  %v175_v45 = vld [vmem:[#allocation5 + $0x3d8] sm:$0xff]  ;;  %v309_v48 = vld [vmem:[#allocation5 + $0x808] sm:$0xff] }
  0x9b   :  { %853 = vmatpush1.msra.mxu0 %v137_v49  ;;  %942 = vmatpush1.msra.mxu1 %v425_v50  ;;  %v167_v49 = vld [vmem:[#allocation5 + $0x398] sm:$0xff]  ;;  %v308_v50 = vld [vmem:[#allocation5 + $0x800] sm:$0xff] }
  0x9c   :  { %854 = vmatprep.subr.mxu0 %v129_v51  ;;  %943 = vmatprep.subr.mxu1 %v417_v52  ;;  %v166_v51 = vld [vmem:[#allocation5 + $0x390] sm:$0xff]  ;;  %v300_v52 = vld [vmem:[#allocation5 + $0x7c0] sm:$0xff] }
  0x9d   :  { %855 = vmatpush1.msra.mxu0 %v128_v53  ;;  %944 = vmatpush1.msra.mxu1 %v416_v55  ;;  %v299_v53 = vld [vmem:[#allocation5 + $0x7b8] sm:$0xff]  ;;  %v157_v55 = vld [vmem:[#allocation5 + $0x348] sm:$0xff] }
  0x9e   :  { %856 = vmatprep.subr.mxu0 %v120_v56  ;;  %945 = vmatprep.subr.mxu1 %v408_v59  ;;  %v291_v56 = vld [vmem:[#allocation5 + $0x778] sm:$0xff]  ;;  %v149_v59 = vld [vmem:[#allocation5 + $0x308] sm:$0xff] }
  0x9f   :  { %857 = vmatpush1.msra.mxu0 %v119_v60  ;;  %946 = vmatpush1.msra.mxu1 %v407_v61  ;;  %v290_v60 = vld [vmem:[#allocation5 + $0x770] sm:$0xff]  ;;  %v148_v61 = vld [vmem:[#allocation5 + $0x300] sm:$0xff] }
  0xa0   :  { %858 = vmatprep.subr.mxu0 %v111_v62  ;;  %947 = vmatprep.subr.mxu1 %v399_v63  ;;  %v282_v62 = vld [vmem:[#allocation5 + $0x730] sm:$0xff]  ;;  %v140_v63 = vld [vmem:[#allocation5 + $0x2c0] sm:$0xff] }
  0xa1   :  { %859 = vmatpush1.msra.mxu0 %v110_v1  ;;  %948 = vmatpush1.msra.mxu1 %v398_v4  ;;  %v281_v1 = vld [vmem:[#allocation5 + $0x728] sm:$0xff]  ;;  %v139_v4 = vld [vmem:[#allocation5 + $0x2b8] sm:$0xff] }
  0xa2   :  { %860 = vmatprep.subr.mxu0 %v102_v7  ;;  %949 = vmatprep.subr.mxu1 %v390_v10  ;;  %v273_v7 = vld [vmem:[#allocation5 + $0x6e8] sm:$0xff]  ;;  %v131_v10 = vld [vmem:[#allocation5 + $0x278] sm:$0xff] }
  0xa3   :  { %861 = vmatpush1.msra.mxu0 %v101_v11  ;;  %950 = vmatpush1.msra.mxu1 %v389_v12  ;;  %v272_v11 = vld [vmem:[#allocation5 + $0x6e0] sm:$0xff]  ;;  %v130_v12 = vld [vmem:[#allocation5 + $0x270] sm:$0xff] }
  0xa4   :  { %862 = vmatprep.subr.mxu0 %v93_v13  ;;  %951 = vmatprep.subr.mxu1 %v381_v14  ;;  %v264_v13 = vld [vmem:[#allocation5 + $0x6a0] sm:$0xff]  ;;  %v122_v14 = vld [vmem:[#allocation5 + $0x230] sm:$0xff] }
  0xa5   :  { %863 = vmatpush1.msra.mxu0 %v92_v15  ;;  %952 = vmatpush1.msra.mxu1 %v380_v16  ;;  %v263_v15 = vld [vmem:[#allocation5 + $0x698] sm:$0xff]  ;;  %v121_v16 = vld [vmem:[#allocation5 + $0x228] sm:$0xff] }
  0xa6   :  { %864 = vmatprep.subr.mxu0 %v84_v17  ;;  %953 = vmatprep.subr.mxu1 %v372_v18  ;;  %v255_v17 = vld [vmem:[#allocation5 + $0x658] sm:$0xff]  ;;  %v113_v18 = vld [vmem:[#allocation5 + $0x1e8] sm:$0xff] }
  0xa7   :  { %865 = vmatpush1.msra.mxu0 %v83_v19  ;;  %954 = vmatpush1.msra.mxu1 %v371_v20  ;;  %v254_v19 = vld [vmem:[#allocation5 + $0x650] sm:$0xff]  ;;  %v112_v20 = vld [vmem:[#allocation5 + $0x1e0] sm:$0xff] }
  0xa8   :  { %866 = vmatprep.subr.mxu0 %v75_v21  ;;  %955 = vmatprep.subr.mxu1 %v363_v22  ;;  %v246_v21 = vld [vmem:[#allocation5 + $0x610] sm:$0xff]  ;;  %v104_v22 = vld [vmem:[#allocation5 + $0x1a0] sm:$0xff] }
  0xa9   :  { %867 = vmatpush1.msra.mxu0 %v74_v23  ;;  %956 = vmatpush1.msra.mxu1 %v362_v24  ;;  %v245_v23 = vld [vmem:[#allocation5 + $0x608] sm:$0xff]  ;;  %v103_v24 = vld [vmem:[#allocation5 + $0x198] sm:$0xff] }
  0xaa   :  { %868 = vmatprep.subr.mxu0 %v66_v25  ;;  %957 = vmatprep.subr.mxu1 %v354_v26  ;;  %v237_v25 = vld [vmem:[#allocation5 + $0x5c8] sm:$0xff]  ;;  %v95_v26 = vld [vmem:[#allocation5 + $0x158] sm:$0xff] }
  0xab   :  { %869 = vmatpush1.msra.mxu0 %v65_v27  ;;  %958 = vmatpush1.msra.mxu1 %v353_v28  ;;  %v236_v27 = vld [vmem:[#allocation5 + $0x5c0] sm:$0xff]  ;;  %v94_v28 = vld [vmem:[#allocation5 + $0x150] sm:$0xff] }
  0xac   :  { %870 = vmatprep.subr.mxu0 %v57_v29  ;;  %959 = vmatprep.subr.mxu1 %v345_v30  ;;  %v228_v29 = vld [vmem:[#allocation5 + $0x580] sm:$0xff]  ;;  %v86_v30 = vld [vmem:[#allocation5 + $0x110] sm:$0xff] }
  0xad   :  { %871 = vmatpush1.msra.mxu0 %v56_v31  ;;  %960 = vmatpush1.msra.mxu1 %v344_v32  ;;  %v227_v31 = vld [vmem:[#allocation5 + $0x578] sm:$0xff]  ;;  %v85_v32 = vld [vmem:[#allocation5 + $0x108] sm:$0xff] }
  0xae   :  { %872 = vmatprep.subr.mxu0 %v336_v33  ;;  %993 = vmatprep.mubr.f32.mxu1 %v2851_v0  ;;  %v219_v33 = vld [vmem:[#allocation5 + $0x538] sm:$0xff] }
  0xaf   :  { %1018 = vmatprep.subr.mxu1 %v194_v34  ;;  %873 = vmatpush2.msra.mxu0 %v335_v35  ;;  %v77_v34 = vld [vmem:[#allocation5 + $0xc8] sm:$0xff]  ;;  %v218_v35 = vld [vmem:[#allocation5 + $0x530] sm:$0xff] }
  0xb0   :  { %994 = vmatmul.mubr.f32.vlgmr.msra.gmra.mxu1 %v2878_v5  ;;  %874 = vmatprep.subr.mxu0 %v327_v37  ;;  %v158_v5 = vld [vmem:[#allocation5 + $0x350] sm:$0xff] }
  0xb1   :  { %1019 = vmatpush1.msra.mxu1 %v193_v36  ;;  %875 = vmatpush2.msra.mxu0 %v326_v39  ;;  %v76_v36 = vld [vmem:[#allocation5 + $0xc0] sm:$0xff]  ;;  %v210_v37 = vld [vmem:[#allocation5 + $0x4f0] sm:$0xff]  ;;  %v209_v39 = vld [vmem:[#allocation5 + $0x4e8] sm:$0xff] }
  0xb2   :  { %1020 = vmatprep.subr.mxu1 %v185_v38  ;;  %876 = vmatprep.subr.mxu0 %v318_v41  ;;  %v68_v38 = vld [vmem:[#allocation5 + $0x80] sm:$0xff]  ;;  %v201_v41 = vld [vmem:[#allocation5 + $0x4a8] sm:$0xff] }
  0xb3   :  { %1021 = vmatpush1.msra.mxu1 %v184_v40  ;;  %877 = vmatpush2.msra.mxu0 %v317_v44  ;;  %v67_v40 = vld [vmem:[#allocation5 + $0x78] sm:$0xff]  ;;  %v200_v44 = vld [vmem:[#allocation5 + $0x4a0] sm:$0xff] }
  0xb4   :  { %1022 = vmatprep.subr.mxu1 %v176_v42  ;;  %878 = vmatprep.subr.mxu0 %v309_v48  ;;  %v59_v42 = vld [vmem:[#allocation5 + $0x38] sm:$0xff]  ;;  %v338_v48 = vld [vmem:[#allocation5 + $0x8f0] sm:$0xff] }
  0xb5   :  { %1023 = vmatpush1.msra.mxu1 %v175_v45  ;;  %879 = vmatpush2.msra.mxu0 %v308_v50  ;;  %v58_v45 = vld [vmem:[#allocation5 + $0x30] sm:$0xff]  ;;  %v337_v50 = vld [vmem:[#allocation5 + $0x8e8] sm:$0xff] }
  0xb6   :  { %1024 = vmatprep.subr.mxu1 %v167_v49  ;;  %880 = vmatprep.subr.mxu0 %v300_v52  ;;  %v482_v49 = vld [vmem:[#allocation5 + $0xd70] sm:$0xff]  ;;  %v329_v52 = vld [vmem:[#allocation5 + $0x8a8] sm:$0xff] }
  0xb7   :  { %1025 = vmatpush1.msra.mxu1 %v166_v51  ;;  %881 = vmatpush2.msra.mxu0 %v299_v53  ;;  %v481_v51 = vld [vmem:[#allocation5 + $0xd68] sm:$0xff]  ;;  %v328_v53 = vld [vmem:[#allocation5 + $0x8a0] sm:$0xff] }
  0xb8   :  { %1026 = vmatprep.subr.mxu1 %v158_v5  ;;  %882 = vmatprep.subr.mxu0 %v291_v56  ;;  %v473_v5 = vld [vmem:[#allocation5 + $0xd28] sm:$0xff]  ;;  %v320_v56 = vld [vmem:[#allocation5 + $0x860] sm:$0xff] }
  0xb9   :  { %1027 = vmatpush1.msra.mxu1 %v157_v55  ;;  %883 = vmatpush2.msra.mxu0 %v290_v60  ;;  %v472_v55 = vld [vmem:[#allocation5 + $0xd20] sm:$0xff]  ;;  %v311_v60 = vld [vmem:[#allocation5 + $0x818] sm:$0xff] }
  0xba   :  { %1028 = vmatprep.subr.mxu1 %v149_v59  ;;  %884 = vmatprep.subr.mxu0 %v282_v62  ;;  %v319_v59 = vld [vmem:[#allocation5 + $0x858] sm:$0xff]  ;;  %v310_v62 = vld [vmem:[#allocation5 + $0x810] sm:$0xff] }
  0xbb   :  { %1029 = vmatpush1.msra.mxu1 %v148_v61  ;;  %885 = vmatpush2.msra.mxu0 %v281_v1  ;;  %v455_v61 = vld [vmem:[#allocation5 + $0xc98] sm:$0xff]  ;;  %v302_v1 = vld [vmem:[#allocation5 + $0x7d0] sm:$0xff] }
  0xbc   :  { %1030 = vmatprep.subr.mxu1 %v140_v63  ;;  %886 = vmatprep.subr.mxu0 %v273_v7  ;;  %v454_v63 = vld [vmem:[#allocation5 + $0xc90] sm:$0xff]  ;;  %v301_v7 = vld [vmem:[#allocation5 + $0x7c8] sm:$0xff] }
  0xbd   :  { %1031 = vmatpush1.msra.mxu1 %v139_v4  ;;  %887 = vmatpush2.msra.mxu0 %v272_v11  ;;  %v446_v4 = vld [vmem:[#allocation5 + $0xc50] sm:$0xff]  ;;  %v293_v11 = vld [vmem:[#allocation5 + $0x788] sm:$0xff] }
  0xbe   :  { %1032 = vmatprep.subr.mxu1 %v131_v10  ;;  %888 = vmatprep.subr.mxu0 %v264_v13  ;;  %v445_v10 = vld [vmem:[#allocation5 + $0xc48] sm:$0xff]  ;;  %v292_v13 = vld [vmem:[#allocation5 + $0x780] sm:$0xff] }
  0xbf   :  { %1033 = vmatpush1.msra.mxu1 %v130_v12  ;;  %889 = vmatpush2.msra.mxu0 %v263_v15  ;;  %v437_v12 = vld [vmem:[#allocation5 + $0xc08] sm:$0xff]  ;;  %v284_v15 = vld [vmem:[#allocation5 + $0x740] sm:$0xff] }
  0xc0   :  { %1034 = vmatprep.subr.mxu1 %v122_v14  ;;  %890 = vmatprep.subr.mxu0 %v255_v17  ;;  %v436_v14 = vld [vmem:[#allocation5 + $0xc00] sm:$0xff]  ;;  %v283_v17 = vld [vmem:[#allocation5 + $0x738] sm:$0xff] }
  0xc1   :  { %1035 = vmatpush1.msra.mxu1 %v121_v16  ;;  %891 = vmatpush2.msra.mxu0 %v254_v19  ;;  %v428_v16 = vld [vmem:[#allocation5 + $0xbc0] sm:$0xff]  ;;  %v275_v19 = vld [vmem:[#allocation5 + $0x6f8] sm:$0xff] }
  0xc2   :  { %1036 = vmatprep.subr.mxu1 %v113_v18  ;;  %892 = vmatprep.subr.mxu0 %v246_v21  ;;  %v427_v18 = vld [vmem:[#allocation5 + $0xbb8] sm:$0xff]  ;;  %v274_v21 = vld [vmem:[#allocation5 + $0x6f0] sm:$0xff] }
  0xc3   :  { %1037 = vmatpush1.msra.mxu1 %v112_v20  ;;  %893 = vmatpush2.msra.mxu0 %v245_v23  ;;  %v419_v20 = vld [vmem:[#allocation5 + $0xb78] sm:$0xff]  ;;  %v266_v23 = vld [vmem:[#allocation5 + $0x6b0] sm:$0xff] }
  0xc4   :  { %1038 = vmatprep.subr.mxu1 %v104_v22  ;;  %894 = vmatprep.subr.mxu0 %v237_v25  ;;  %v418_v22 = vld [vmem:[#allocation5 + $0xb70] sm:$0xff]  ;;  %v265_v25 = vld [vmem:[#allocation5 + $0x6a8] sm:$0xff] }
  0xc5   :  { %1039 = vmatpush1.msra.mxu1 %v103_v24  ;;  %895 = vmatpush2.msra.mxu0 %v236_v27  ;;  %v410_v24 = vld [vmem:[#allocation5 + $0xb30] sm:$0xff]  ;;  %v257_v27 = vld [vmem:[#allocation5 + $0x668] sm:$0xff] }
  0xc6   :  { %1040 = vmatprep.subr.mxu1 %v95_v26  ;;  %896 = vmatprep.subr.mxu0 %v228_v29  ;;  %v409_v26 = vld [vmem:[#allocation5 + $0xb28] sm:$0xff]  ;;  %v256_v29 = vld [vmem:[#allocation5 + $0x660] sm:$0xff] }
  0xc7   :  { %1041 = vmatpush1.msra.mxu1 %v94_v28  ;;  %897 = vmatpush2.msra.mxu0 %v227_v31  ;;  %v401_v28 = vld [vmem:[#allocation5 + $0xae8] sm:$0xff]  ;;  %v248_v31 = vld [vmem:[#allocation5 + $0x620] sm:$0xff] }
  0xc8   :  { %1042 = vmatprep.subr.mxu1 %v86_v30  ;;  %898 = vmatprep.subr.mxu0 %v219_v33  ;;  %v400_v30 = vld [vmem:[#allocation5 + $0xae0] sm:$0xff]  ;;  %v247_v33 = vld [vmem:[#allocation5 + $0x618] sm:$0xff] }
  0xc9   :  { %1043 = vmatpush1.msra.mxu1 %v85_v32  ;;  %899 = vmatpush2.msra.mxu0 %v218_v35  ;;  %v392_v32 = vld [vmem:[#allocation5 + $0xaa0] sm:$0xff]  ;;  %v239_v35 = vld [vmem:[#allocation5 + $0x5d8] sm:$0xff] }
  0xca   :  { %1044 = vmatprep.subr.mxu1 %v77_v34  ;;  %900 = vmatprep.subr.mxu0 %v210_v37  ;;  %v391_v34 = vld [vmem:[#allocation5 + $0xa98] sm:$0xff]  ;;  %v238_v37 = vld [vmem:[#allocation5 + $0x5d0] sm:$0xff] }
  0xcb   :  { %1045 = vmatpush1.msra.mxu1 %v76_v36  ;;  %901 = vmatpush2.msra.mxu0 %v209_v39  ;;  %v383_v36 = vld [vmem:[#allocation5 + $0xa58] sm:$0xff]  ;;  %v230_v39 = vld [vmem:[#allocation5 + $0x590] sm:$0xff] }
  0xcc   :  { %1046 = vmatprep.subr.mxu1 %v68_v38  ;;  %902 = vmatprep.subr.mxu0 %v201_v41  ;;  %v382_v38 = vld [vmem:[#allocation5 + $0xa50] sm:$0xff]  ;;  %v229_v41 = vld [vmem:[#allocation5 + $0x588] sm:$0xff] }
  0xcd   :  { %1047 = vmatpush1.msra.mxu1 %v67_v40  ;;  %903 = vmatpush2.msra.mxu0 %v200_v44  ;;  %v374_v40 = vld [vmem:[#allocation5 + $0xa10] sm:$0xff]  ;;  %v221_v44 = vld [vmem:[#allocation5 + $0x548] sm:$0xff] }
  0xce   :  { %1048 = vmatprep.subr.mxu1 %v59_v42  ;;  %904 = vmatprep.mubr.f32.mxu0 %v2881_v3  ;;  %v464_v3 = vld [vmem:[#allocation5 + $0xce0] sm:$0xff]  ;;  %v373_v42 = vld [vmem:[#allocation5 + $0xa08] sm:$0xff] }
  0xcf   :  { %1049 = vmatpush1.msra.mxu1 %v58_v45  ;;  %905 = vmatmul.mubr.f32.vlgmr.msra.gmra.mxu0 %v2883_v6  ;;  %v463_v6 = vld [vmem:[#allocation5 + $0xcd8] sm:$0xff]  ;;  %v365_v45 = vld [vmem:[#allocation5 + $0x9c8] sm:$0xff] }
  0xd0   :  { %1050 = vmatprep.subr.mxu1 %v338_v48  ;;  %1107 = vmatprep.subr.mxu0 %v482_v49  ;;  %v220_v48 = vld [vmem:[#allocation5 + $0x540] sm:$0xff] }
  0xd1   :  { %999 = vmatprep.mubr.f32.mxu1 %v2851_v0  ;;  %1051 = vmatpush2.msra.mxu1 %v337_v50  ;;  %v364_v49 = vld [vmem:[#allocation5 + $0x9c0] sm:$0xff] }
  0xd2   :  { %1108 = vmatpush1.msra.mxu0 %v481_v51  ;;  %1000 = vmatmul.mubr.f32.gmra.mxu1 %v2892_v47  ;;  %v212_v50 = vld [vmem:[#allocation5 + $0x500] sm:$0xff] }
  0xd3   :  { %1052 = vmatprep.subr.mxu1 %v329_v52  ;;  %1109 = vmatprep.subr.mxu0 %v473_v5  ;;  %v356_v51 = vld [vmem:[#allocation5 + $0x980] sm:$0xff]  ;;  %v211_v52 = vld [vmem:[#allocation5 + $0x4f8] sm:$0xff] }
  0xd4   :  { %910 = vmatprep.mubr.f32.mxu0 %v2887_v43  ;;  %1053 = vmatpush2.msra.mxu1 %v328_v53  ;;  %v355_v5 = vld [vmem:[#allocation5 + $0x978] sm:$0xff] }
  0xd5   :  { %1110 = vmatpush1.msra.mxu0 %v472_v55  ;;  %1054 = vmatprep.subr.mxu1 %v320_v56  ;;  %v203_v53 = vld [vmem:[#allocation5 + $0x4b8] sm:$0xff]  ;;  %v202_v56 = vld [vmem:[#allocation5 + $0x4b0] sm:$0xff] }
  0xd6   :  { %911 = vmatmul.mubr.f32.gmra.mxu0 %v2889_v46  ;;  %1111 = vmatprep.subr.mxu0 %v464_v3  ;;  %v347_v55 = vld [vmem:[#allocation5 + $0x938] sm:$0xff]  ;;  %v346_v3 = vld [vmem:[#allocation5 + $0x930] sm:$0xff] }
  0xd7   :  { %1055 = vmatpush2.msra.mxu1 %v319_v59  ;;  %1112 = vmatpush1.msra.mxu0 %v463_v6  ;;  %v2949_v59 = vld [vmem:[#allocation2 + $0x8] sm:$0xff]  ;;  %v483_v6 = vld [vmem:[#allocation5 + $0xd78] sm:$0xff] }
  0xd8   :  { %1056 = vmatprep.subr.mxu1 %v311_v60  ;;  %1113 = vmatprep.subr.mxu0 %v455_v61  ;;  %v2953_v60 = vld [vmem:[#allocation2] sm:$0xff]  ;;  %v339_v61 = vld [vmem:[#allocation5 + $0x8f8] sm:$0xff] }
  0xd9   :  { %1057 = vmatpush2.msra.mxu1 %v310_v62  ;;  %1114 = vmatpush1.msra.mxu0 %v454_v63  ;;  %v2956_v62 = vld [vmem:[#allocation2 + $0x10] sm:$0xff] }
  0xda   :  { %1058 = vmatprep.subr.mxu1 %v302_v1  ;;  %1115 = vmatprep.subr.mxu0 %v446_v4  ;;  %v474_v63 = vld [vmem:[#allocation5 + $0xd30] sm:$0xff]  ;;  %v465_v1 = vld [vmem:[#allocation5 + $0xce8] sm:$0xff]  ;;  %v195_v4 = vld [vmem:[#allocation5 + $0x478] sm:$0xff] }
  0xdb   :  { %1059 = vmatpush2.msra.mxu1 %v301_v7  ;;  %1116 = vmatpush1.msra.mxu0 %v445_v10  ;;  %v330_v7 = vld [vmem:[#allocation5 + $0x8b0] sm:$0xff] }
  0xdc   :  { %1060 = vmatprep.subr.mxu1 %v293_v11  ;;  %1117 = vmatprep.subr.mxu0 %v437_v12  ;;  %v186_v10 = vld [vmem:[#allocation5 + $0x430] sm:$0xff]  ;;  %v312_v11 = vld [vmem:[#allocation5 + $0x820] sm:$0xff] }
  0xdd   :  { %1061 = vmatpush2.msra.mxu1 %v292_v13  ;;  %1118 = vmatpush1.msra.mxu0 %v436_v14  ;;  %v168_v12 = vld [vmem:[#allocation5 + $0x3a0] sm:$0xff]  ;;  %v294_v13 = vld [vmem:[#allocation5 + $0x790] sm:$0xff] }
  0xde   :  { %1062 = vmatprep.subr.mxu1 %v284_v15  ;;  %1119 = vmatprep.subr.mxu0 %v428_v16  ;;  %v420_v14 = vld [vmem:[#allocation5 + $0xb80] sm:$0xff]  ;;  %v411_v15 = vld [vmem:[#allocation5 + $0xb38] sm:$0xff]  ;;  %v141_v16 = vld [vmem:[#allocation5 + $0x2c8] sm:$0xff] }
  0xdf   :  { %1063 = vmatpush2.msra.mxu1 %v283_v17  ;;  %1120 = vmatpush1.msra.mxu0 %v427_v18  ;;  %v276_v17 = vld [vmem:[#allocation5 + $0x700] sm:$0xff]  ;;  %v402_v18 = vld [vmem:[#allocation5 + $0xaf0] sm:$0xff] }
  0xe0   :  { %1064 = vmatprep.subr.mxu1 %v275_v19  ;;  %1121 = vmatprep.subr.mxu0 %v419_v20  ;;  %v132_v19 = vld [vmem:[#allocation5 + $0x280] sm:$0xff]  ;;  %v393_v20 = vld [vmem:[#allocation5 + $0xaa8] sm:$0xff] }
  0xe1   :  { %1065 = vmatpush2.msra.mxu1 %v274_v21  ;;  %1122 = vmatpush1.msra.mxu0 %v418_v22  ;;  %v267_v21 = vld [vmem:[#allocation5 + $0x6b8] sm:$0xff] }
  0xe2   :  { %1066 = vmatprep.subr.mxu1 %v266_v23  ;;  %1123 = vmatprep.subr.mxu0 %v410_v24  ;;  %v123_v22 = vld [vmem:[#allocation5 + $0x238] sm:$0xff]  ;;  %v384_v23 = vld [vmem:[#allocation5 + $0xa60] sm:$0xff]  ;;  %v258_v24 = vld [vmem:[#allocation5 + $0x670] sm:$0xff] }
  0xe3   :  { %1067 = vmatpush2.msra.mxu1 %v265_v25  ;;  %1124 = vmatpush1.msra.mxu0 %v409_v26  ;;  %v114_v25 = vld [vmem:[#allocation5 + $0x1f0] sm:$0xff]  ;;  %v375_v26 = vld [vmem:[#allocation5 + $0xa18] sm:$0xff] }
  0xe4   :  { %1068 = vmatprep.subr.mxu1 %v257_v27  ;;  %1125 = vmatprep.subr.mxu0 %v401_v28  ;;  %v249_v27 = vld [vmem:[#allocation5 + $0x628] sm:$0xff] }
  0xe5   :  { %1069 = vmatpush2.msra.mxu1 %v256_v29  ;;  %1126 = vmatpush1.msra.mxu0 %v400_v30  ;;  %v105_v28 = vld [vmem:[#allocation5 + $0x1a8] sm:$0xff]  ;;  %v366_v29 = vld [vmem:[#allocation5 + $0x9d0] sm:$0xff]  ;;  %v240_v30 = vld [vmem:[#allocation5 + $0x5e0] sm:$0xff] }
  0xe6   :  { %1070 = vmatprep.subr.mxu1 %v248_v31  ;;  %1127 = vmatprep.subr.mxu0 %v392_v32  ;;  %v96_v31 = vld [vmem:[#allocation5 + $0x160] sm:$0xff]  ;;  %v357_v32 = vld [vmem:[#allocation5 + $0x988] sm:$0xff] }
  0xe7   :  { %1071 = vmatpush2.msra.mxu1 %v247_v33  ;;  %1128 = vmatpush1.msra.mxu0 %v391_v34  ;;  %v231_v33 = vld [vmem:[#allocation5 + $0x598] sm:$0xff] }
  0xe8   :  { %1072 = vmatprep.subr.mxu1 %v239_v35  ;;  %1129 = vmatprep.subr.mxu0 %v383_v36  ;;  %v87_v34 = vld [vmem:[#allocation5 + $0x118] sm:$0xff]  ;;  %v348_v35 = vld [vmem:[#allocation5 + $0x940] sm:$0xff]  ;;  %v222_v36 = vld [vmem:[#allocation5 + $0x550] sm:$0xff] }
  0xe9   :  { %916 = vmatprep.mubr.f32.mxu0 %v2897_v54  ;;  %1005 = vmatprep.mubr.f32.mxu1 %v2851_v0 }
  0xea   :  { %1073 = vmatpush2.msra.mxu1 %v238_v37  ;;  %1130 = vmatpush1.msra.mxu0 %v382_v38  ;;  %v78_v37 = vld [vmem:[#allocation5 + $0xd0] sm:$0xff]  ;;  %v213_v38 = vld [vmem:[#allocation5 + $0x508] sm:$0xff] }
  0xeb   :  { %1006 = vmatmul.mubr.f32.gmra.mxu1 %v2902_v58  ;;  %917 = vmatmul.mubr.f32.gmra.mxu0 %v2899_v57 }
  0xec   :  { %1074 = vmatprep.subr.mxu1 %v230_v39  ;;  %1131 = vmatprep.subr.mxu0 %v374_v40  ;;  %v69_v39 = vld [vmem:[#allocation5 + $0x88] sm:$0xff]  ;;  %v204_v40 = vld [vmem:[#allocation5 + $0x4c0] sm:$0xff] }
  0xed   :  { %1075 = vmatpush2.msra.mxu1 %v229_v41  ;;  %1132 = vmatpush1.msra.mxu0 %v373_v42  ;;  %v2770_v41 = vld [vmem:[#allocation2 + $0x28] sm:$0xff]  ;;  %v60_v42 = vld [vmem:[#allocation5 + $0x40] sm:$0xff] }
  0xee   :  { %1076 = vmatprep.subr.mxu1 %v221_v44  ;;  %1133 = vmatprep.subr.mxu0 %v365_v45  ;;  %v2771_v44 = vld [vmem:[#allocation2 + $0x40] sm:$0xff] }
  0xef   :  { %922 = vmatprep.mubr.f32.mxu0 %v2907_v2  ;;  %1011 = vmatprep.mubr.f32.mxu1 %v2851_v0 }
  0xf0   :  { %1077 = vmatpush2.msra.mxu1 %v220_v48  ;;  %1134 = vmatpush1.msra.mxu0 %v364_v49 }
  0xf1   :  { %1012 = vmatmul.mubr.f32.gmra.mxu1 %v2912_v9  ;;  %923 = vmatmul.mubr.f32.gmra.mxu0 %v2909_v8 }
  0xf2   :  { %1078 = vmatprep.subr.mxu1 %v212_v50  ;;  %1135 = vmatprep.subr.mxu0 %v356_v51  ;;  %v2772_v50 = vld [vmem:[#allocation2 + $0x58] sm:$0xff]  ;;  %v2773_v51 = vld [vmem:[#allocation2 + $0x20] sm:$0xff] }
  0xf3   :  { %1079 = vmatpush2.msra.mxu1 %v211_v52  ;;  %1136 = vmatpush1.msra.mxu0 %v355_v5  ;;  %v2774_v52 = vld [vmem:[#allocation2 + $0x18] sm:$0xff] }
  0xf4   :  { %1080 = vmatprep.subr.mxu1 %v203_v53  ;;  %1137 = vmatprep.subr.mxu0 %v347_v55  ;;  %v2775_v5 = vld [vmem:[#allocation2 + $0x38] sm:$0xff]  ;;  %v2776_v53 = vld [vmem:[#allocation2 + $0x30] sm:$0xff] }
  0xf5   :  { %1081 = vmatpush2.msra.mxu1 %v202_v56  ;;  %1082 = vmatprep.mubr.f32.mxu1 %v2949_v59  ;;  %v2777_v55 = vld [vmem:[#allocation2 + $0x50] sm:$0xff]  ;;  %v2778_v56 = vld [vmem:[#allocation2 + $0x48] sm:$0xff] }
  0xf6   :  { %1138 = vmatpush1.msra.mxu0 %v346_v3  ;;  %1171 = vmatprep.mubr.f32.mxu0 %v2851_v0 }
  0xf7   :  { %1083 = vmatmul.mubr.f32.vlgmr.msra.gmra.mxu1 %v2953_v60  ;;  %1172 = vmatmul.mubr.f32.vlgmr.msra.gmra.mxu0 %v2956_v62 }
  0xf8   :  { %1088 = vmatprep.mubr.f32.mxu1 %v2887_v43  ;;  %1177 = vmatprep.mubr.f32.mxu0 %v2851_v0  ;;  %v456_v43 = vld [vmem:[#allocation5 + $0xca0] sm:$0xff] }
  0xf9   :  { %2589 = vmatprep.subr.mxu1 %v483_v6  ;;  %2477 = vmatprep.subr.mxu0 %v339_v61 }
  0xfa   :  { %2590 = vmatpush3.msra.mxu1 %v483_v6  ;;  %2478 = vmatpush3.msra.mxu0 %v195_v4 }
  0xfb   :  { %1089 = vmatmul.mubr.f32.gmra.mxu1 %v2889_v46  ;;  %2591 = vmatprep.subr.mxu1 %v474_v63  ;;  %v321_v46 = vld [vmem:[#allocation5 + $0x868] sm:$0xff] }
  0xfc   :  { %1178 = vmatmul.mubr.f32.gmra.mxu0 %v2892_v47  ;;  %1094 = vmatprep.mubr.f32.mxu1 %v2897_v54  ;;  %v447_v47 = vld [vmem:[#allocation5 + $0xc58] sm:$0xff]  ;;  %v177_v54 = vld [vmem:[#allocation5 + $0x3e8] sm:$0xff] }
  0xfd   :  { %1183 = vmatprep.mubr.f32.mxu0 %v2851_v0  ;;  %2592 = vmatpush3.msra.mxu1 %v474_v63 }
  0xfe   :  { %2593 = vmatprep.subr.mxu1 %v465_v1  ;;  %2479 = vmatprep.subr.mxu0 %v330_v7 }
  0xff   :  { %1095 = vmatmul.mubr.f32.gmra.mxu1 %v2899_v57  ;;  %2480 = vmatpush3.msra.mxu0 %v186_v10  ;;  %v438_v57 = vld [vmem:[#allocation5 + $0xc10] sm:$0xff] }
 0x100   :  { %1184 = vmatmul.mubr.f32.gmra.mxu0 %v2902_v58  ;;  %1100 = vmatprep.mubr.f32.mxu1 %v2907_v2  ;;  %v303_v58 = vld [vmem:[#allocation5 + $0x7d8] sm:$0xff]  ;;  %v429_v2 = vld [vmem:[#allocation5 + $0xbc8] sm:$0xff]  ;;  %v639_v45 = vpop.f32.mrf.mxu1 }
 0x101   :  { %1189 = vmatprep.mubr.f32.mxu0 %v2851_v0  ;;  %2594 = vmatpush3.msra.mxu1 %v465_v1  ;;  %v159_v0 = vld [vmem:[#allocation5 + $0x358] sm:$0xff] }
 0x102   :  { %2595 = vmatprep.subr.mxu1 %v456_v43  ;;  %2481 = vmatprep.subr.mxu0 %v321_v46 }
 0x103   :  { %1101 = vmatmul.mubr.f32.gmra.mxu1 %v2909_v8  ;;  %2482 = vmatpush3.msra.mxu0 %v177_v54  ;;  %v150_v8 = vld [vmem:[#allocation5 + $0x310] sm:$0xff] }
 0x104   :  { %1190 = vmatmul.mubr.f32.gmra.mxu0 %v2912_v9  ;;  %2596 = vmatpush3.msra.mxu1 %v456_v43  ;;  %v285_v9 = vld [vmem:[#allocation5 + $0x748] sm:$0xff] }
 0x105   :  { %2597 = vmatprep.subr.mxu1 %v447_v47  ;;  %2483 = vmatprep.subr.mxu0 %v312_v11 }
 0x106   :  { %2598 = vmatpush3.msra.mxu1 %v447_v47  ;;  %2484 = vmatpush3.msra.mxu0 %v168_v12 }
 0x107   :  { %2599 = vmatprep.subr.mxu1 %v438_v57  ;;  %2485 = vmatprep.subr.mxu0 %v303_v58 }
 0x108   :  { %2600 = vmatpush3.msra.mxu1 %v438_v57  ;;  %2486 = vmatpush3.msra.mxu0 %v159_v0 }
 0x109   :  { %2601 = vmatprep.subr.mxu1 %v429_v2  ;;  %2487 = vmatprep.subr.mxu0 %v294_v13 }
 0x10a   :  { %2602 = vmatpush3.msra.mxu1 %v429_v2  ;;  %2488 = vmatpush3.msra.mxu0 %v150_v8 }
 0x10b   :  { %2603 = vmatprep.subr.mxu1 %v420_v14  ;;  %2489 = vmatprep.subr.mxu0 %v285_v9 }
 0x10c   :  { %2604 = vmatpush3.msra.mxu1 %v420_v14  ;;  %2490 = vmatpush3.msra.mxu0 %v141_v16 }
 0x10d   :  { %2605 = vmatprep.subr.mxu1 %v411_v15  ;;  %2491 = vmatprep.subr.mxu0 %v276_v17 }
 0x10e   :  { %2606 = vmatpush3.msra.mxu1 %v411_v15  ;;  %2492 = vmatpush3.msra.mxu0 %v132_v19 }
 0x10f   :  { %2607 = vmatprep.subr.mxu1 %v402_v18  ;;  %2621 = vmatprep.mubr.f32.mxu1 %v2956_v62 }
 0x110   :  { %2608 = vmatpush3.msra.mxu1 %v402_v18  ;;  %2493 = vmatprep.subr.mxu0 %v267_v21 }
 0x111   :  { %2609 = vmatprep.subr.mxu1 %v393_v20  ;;  %2494 = vmatpush3.msra.mxu0 %v123_v22 }
 0x112   :  { %2610 = vmatpush3.msra.mxu1 %v393_v20  ;;  %2495 = vmatprep.subr.mxu0 %v258_v24 }
 0x113   :  { %2611 = vmatprep.subr.mxu1 %v384_v23  ;;  %2496 = vmatpush3.msra.mxu0 %v114_v25 }
 0x114   :  { %2612 = vmatpush3.msra.mxu1 %v384_v23  ;;  %2497 = vmatprep.subr.mxu0 %v249_v27 }
 0x115   :  { %2613 = vmatprep.subr.mxu1 %v375_v26  ;;  %2498 = vmatpush3.msra.mxu0 %v105_v28 }
 0x116   :  { %2614 = vmatpush3.msra.mxu1 %v375_v26  ;;  %2499 = vmatprep.subr.mxu0 %v240_v30 }
 0x117   :  { %2615 = vmatprep.subr.mxu1 %v366_v29  ;;  %2500 = vmatpush3.msra.mxu0 %v96_v31 }
 0x118   :  { %2616 = vmatpush3.msra.mxu1 %v366_v29  ;;  %2501 = vmatprep.subr.mxu0 %v231_v33 }
 0x119   :  { %2617 = vmatprep.subr.mxu1 %v357_v32  ;;  %2502 = vmatpush3.msra.mxu0 %v87_v34 }
 0x11a   :  { %2618 = vmatpush3.msra.mxu1 %v357_v32  ;;  %2503 = vmatprep.subr.mxu0 %v222_v36 }
 0x11b   :  { %2619 = vmatprep.subr.mxu1 %v348_v35  ;;  %2504 = vmatpush3.msra.mxu0 %v78_v37 }
 0x11c   :  { %2620 = vmatpush3.msra.mxu1 %v348_v35  ;;  %2505 = vmatprep.subr.mxu0 %v213_v38 }
 0x11d   :  { %2622 = vmatmul.mubr.f32.vlgmr.msra.gmra.mxu1 %v2770_v41  ;;  %2506 = vmatpush3.msra.mxu0 %v69_v39 }
 0x11e   :  { %2624 = vmatprep.mubr.f32.mxu1 %v2771_v44  ;;  %2507 = vmatprep.subr.mxu0 %v204_v40 }
 0x11f   :  { %1260 = vmatprep.mubr.f32.mxu0 %v2949_v59  ;;  %v550_v48 = vpop.f32.mrf.mxu0  ;;  %2508 = vmatpush3.msra.mxu0 %v60_v42  ;;  %v641_v59 = vpop.f32.mrf.mxu1 }
 0x120   :  { %v640_v49 = vadd.f32 %v639_v45, %v550_v48  ;;  %1261 = vmatmul.mubr.f32.vlgmr.msra.gmra.mxu0 %v2953_v60 }
 0x121   :  { %2625 = vmatmul.mubr.f32.gmra.mxu1 %v2772_v50  ;;  %1265 = vmatprep.mubr.f32.mxu0 %v2773_v51  ;;  %v552_v3 = vpop.f32.mrf.mxu0 }
 0x122   :  { %2631 = vmatprep.mubr.f32.mxu1 %v640_v49  ;;  %v642_v34 = vadd.f32 %v641_v59, %v552_v3 }
 0x124   :  { %1266 = vmatmul.mubr.f32.gmra.mxu0 %v2774_v52 }
 0x125   :  { %1270 = vmatprep.mubr.f32.mxu0 %v2775_v5 }
 0x128   :  { %1271 = vmatmul.mubr.f32.gmra.mxu0 %v2776_v53 }
 0x129   :  { %1275 = vmatprep.mubr.f32.mxu0 %v2777_v55 }
 0x12c   :  { %1276 = vmatmul.mubr.f32.gmra.mxu0 %v2778_v56 }
 0x134   :  { %v556_v6 = vpop.f32.mrf.mxu0  ;;  %v645_v61 = vpop.f32.mrf.mxu1 }
 0x135   :  { %v646_v25 = vadd.f32 %v645_v61, %v556_v6 }
 0x136   :  { %v558_v62 = vpop.f32.mrf.mxu0  ;;  %v647_v63 = vpop.f32.mrf.mxu1 }
 0x137   :  { %v2974_v60 = vadd.f32 %v647_v63, %v558_v62 }
 0x13a   :  { %v562_v1 = vpop.f32.mrf.mxu0  ;;  %v651_v4 = vpop.f32.mrf.mxu1 }
 0x13b   :  { %v652_v7 = vadd.f32 %v651_v4, %v562_v1 }
 0x13c   :  { %v564_v43 = vpop.f32.mrf.mxu0  ;;  %v653_v10 = vpop.f32.mrf.mxu1 }
 0x13d   :  { %v2976_v46 = vadd.f32 %v653_v10, %v564_v43  ;;  %2645 = vmatprep.mubr.f32.mxu0 %v652_v7 }
 0x140   :  { %v568_v47 = vpop.f32.mrf.mxu0  ;;  %v657_v54 = vpop.f32.mrf.mxu1 }
 0x141   :  { %v658_v33 = vadd.f32 %v657_v54, %v568_v47 }
 0x142   :  { %v570_v11 = vpop.f32.mrf.mxu0  ;;  %v659_v57 = vpop.f32.mrf.mxu1 }
 0x143   :  { %v2978_v12 = vadd.f32 %v659_v57, %v570_v11 }
 0x147   :  { %v728_v58 = vpop.f32.mrf.mxu1  ;;  %v817_v2 = vpop.f32.mrf.mxu0 }
 0x148   :  { %v2980_v0 = vadd.f32 %v817_v2, %v728_v58 }
 0x149   :  { %v730_v13 = vpop.f32.mrf.mxu1  ;;  %v819_v14 = vpop.f32.mrf.mxu0 }
 0x14a   :  { %v820_v19 = vadd.f32 %v819_v14, %v730_v13 }
 0x14d   :  { %v823_v8 = vpop.f32.mrf.mxu0  ;;  %v734_v9 = vpop.f32.mrf.mxu1 }
 0x14e   :  { %v2982_v15 = vadd.f32 %v823_v8, %v734_v9 }
 0x14f   :  { %v825_v16 = vpop.f32.mrf.mxu0  ;;  %v736_v17 = vpop.f32.mrf.mxu1 }
 0x150   :  { %v826_v18 = vadd.f32 %v825_v16, %v736_v17 }
 0x152   :  { %2627 = vmatprep.subr.mxu1 %v826_v18 }
 0x153   :  { %v829_v20 = vpop.f32.mrf.mxu0  ;;  %v740_v21 = vpop.f32.mrf.mxu1  ;;  %2628 = vmatpush3.xpose.msra.mxu1 %v826_v18 }
 0x154   :  { %v2984_v22 = vadd.f32 %v829_v20, %v740_v21  ;;  %2629 = vmatprep.subr.mxu1 %v820_v19 }
 0x155   :  { %v831_v23 = vpop.f32.mrf.mxu0  ;;  %v742_v24 = vpop.f32.mrf.mxu1 }
 0x156   :  { %v832_v31 = vadd.f32 %v831_v23, %v742_v24 }
 0x157   :  { %2630 = vmatpush3.xpose.msra.mxu1 %v820_v19 }
 0x159   :  { %v835_v26 = vpop.f32.mrf.mxu0  ;;  %v746_v27 = vpop.f32.mrf.mxu1 }
 0x15a   :  { %v2986_v28 = vadd.f32 %v835_v26, %v746_v27  ;;  %2632 = vmatmul.mubr.f32.vlgmr.msra.gmra.mxu1 %v646_v25 }
 0x15b   :  { %v837_v29 = vpop.f32.mrf.mxu0  ;;  %v748_v30 = vpop.f32.mrf.mxu1 }
 0x15c   :  { %v838_v32 = vadd.f32 %v837_v29, %v748_v30 }
 0x15e   :  { %2641 = vmatprep.subr.mxu0 %v838_v32 }
 0x15f   :  { %2642 = vmatpush3.xpose.msra.mxu0 %v838_v32 }
 0x160   :  { %2643 = vmatprep.subr.mxu0 %v832_v31 }
 0x163   :  { %2644 = vmatpush3.xpose.msra.mxu0 %v832_v31 }
 0x166   :  { %2646 = vmatmul.mubr.f32.vlgmr.msra.gmra.mxu0 %v658_v33 }
 0x167   :  { %2659 = vmatprep.mubr.f32.mxu0 %v642_v34 }
 0x170   :  { %v995_v35 = vpop.f32.mrf.mxu1 }
 0x172   :  { %v997_v37 = vpop.f32.mrf.mxu1 }
 0x18f   :  { %v906_v36 = vpop.f32.mrf.mxu0 }
 0x190   :  { %v996_v44 = vadd.f32 %v995_v35, %v906_v36 }
 0x191   :  { %v908_v38 = vpop.f32.mrf.mxu0 }
 0x192   :  { %v2988_v39 = vadd.f32 %v997_v37, %v908_v38  ;;  %v1001_v40 = vpop.f32.mrf.mxu1 }
 0x194   :  { %v1003_v45 = vpop.f32.mrf.mxu1 }
 0x196   :  { %v912_v41 = vpop.f32.mrf.mxu0 }
 0x197   :  { %v1002_v42 = vadd.f32 %v1001_v40, %v912_v41 }
 0x198   :  { %v914_v48 = vpop.f32.mrf.mxu0 }
 0x199   :  { %2655 = vmatprep.subr.mxu0 %v1002_v42  ;;  %v3008_v23 = vadd.f32 %v1003_v45, %v914_v48 }
 0x19a   :  { %2656 = vmatpush3.xpose.msra.mxu0 %v1002_v42 }
 0x19b   :  { %2657 = vmatprep.subr.mxu0 %v996_v44 }
 0x19e   :  { %2658 = vmatpush3.xpose.msra.mxu0 %v996_v44 }
 0x1a1   :  { %2660 = vmatmul.mubr.f32.vlgmr.msra.gmra.mxu0 %v2974_v60 }
 0x1ab   :  { %v1007_v49 = vpop.f32.mrf.mxu1  ;;  %v918_v50 = vpop.f32.mrf.mxu0 }
 0x1ac   :  { %v2991_v51 = vadd.f32 %v1007_v49, %v918_v50 }
 0x1ad   :  { %v1009_v52 = vpop.f32.mrf.mxu1  ;;  %v920_v5 = vpop.f32.mrf.mxu0 }
 0x1ae   :  { %v2993_v53 = vadd.f32 %v1009_v52, %v920_v5 }
 0x1b1   :  { %v1013_v55 = vpop.f32.mrf.mxu1  ;;  %v924_v56 = vpop.f32.mrf.mxu0 }
 0x1b2   :  { %v2995_v3 = vadd.f32 %v1013_v55, %v924_v56 }
 0x1b3   :  { %v1015_v59 = vpop.f32.mrf.mxu1  ;;  %v926_v6 = vpop.f32.mrf.mxu0 }
 0x1b4   :  { %v2997_v61 = vadd.f32 %v1015_v59, %v926_v6 }
 0x1b7   :  { %v1084_v62 = vpop.f32.mrf.mxu1  ;;  %v1173_v63 = vpop.f32.mrf.mxu0 }
 0x1b8   :  { %v1174_v10 = vadd.f32 %v1173_v63, %v1084_v62 }
 0x1b9   :  { %v1086_v60 = vpop.f32.mrf.mxu1  ;;  %v1175_v1 = vpop.f32.mrf.mxu0 }
 0x1ba   :  { %v2999_v4 = vadd.f32 %v1175_v1, %v1086_v60 }
 0x1bb   :  { %v1090_v7 = vpop.f32.mrf.mxu1 }
 0x1bc   :  { %v1179_v43 = vpop.f32.mrf.mxu0 }
 0x1bd   :  { %v1180_v47 = vadd.f32 %v1179_v43, %v1090_v7  ;;  %v1092_v54 = vpop.f32.mrf.mxu1 }
 0x1be   :  { %v1181_v11 = vpop.f32.mrf.mxu0 }
 0x1bf   :  { %v3001_v57 = vadd.f32 %v1181_v11, %v1092_v54  ;;  %v1096_v58 = vpop.f32.mrf.mxu1  ;;  %2634 = vmatprep.subr.mxu1 %v1180_v47 }
 0x1c0   :  { %v1185_v2 = vpop.f32.mrf.mxu0  ;;  %2635 = vmatpush3.msra.mxu1 %v1180_v47 }
 0x1c1   :  { %v3003_v13 = vadd.f32 %v1185_v2, %v1096_v58  ;;  %v1098_v14 = vpop.f32.mrf.mxu1  ;;  %2636 = vmatprep.subr.mxu1 %v1174_v10 }
 0x1c2   :  { %v1187_v8 = vpop.f32.mrf.mxu0  ;;  %2637 = vmatpush3.msra.mxu1 %v1174_v10 }
 0x1c3   :  { %v1102_v9 = vpop.f32.mrf.mxu1  ;;  %v1188_v20 = vadd.f32 %v1187_v8, %v1098_v14 }
 0x1c4   :  { %v1191_v16 = vpop.f32.mrf.mxu0 }
 0x1c5   :  { %v3005_v17 = vadd.f32 %v1191_v16, %v1102_v9  ;;  %v1104_v18 = vpop.f32.mrf.mxu1 }
 0x1c6   :  { %v1193_v19 = vpop.f32.mrf.mxu0 }
 0x1c7   :  { %v1194_v21 = vadd.f32 %v1193_v19, %v1104_v18  ;;  %2648 = vmatprep.subr.mxu1 %v3005_v17 }
 0x1c9   :  { %2676 = vmatprep.subr.mxu0 %v1194_v21 }
 0x1ca   :  { %2677 = vmatpush3.msra.mxu0 %v1194_v21 }
 0x1cb   :  { %2678 = vmatprep.subr.mxu0 %v1188_v20 }
 0x1cc   :  { %2679 = vmatpush3.msra.mxu0 %v1188_v20 }
 0x1cd   :  { %2683 = vmatprep.subr.mxu0 %v3008_v23 }
 0x1dd   :  { %v2623_v25 = vpop.f32.mrf.mxu1 }
 0x1df   :  { %v1347_v29 = vpop.f32.mrf.mxu1 }
 0x1e0   :  { %v2509_v24 = vpop.f32.mrf.mxu0 }
 0x1e1   :  { %v2626_v34 = vpop.f32.mrf.mxu1 }
 0x1e2   :  { %v2510_v26 = vpop.f32.mrf.mxu0 }
 0x1e3   :  { %v2511_v27 = vadd.f32 %v2510_v26, %v2509_v24  ;;  %v1357_v40 = vpop.f32.mrf.mxu1 }
 0x1e4   :  { %v2512_v30 = vpop.f32.mrf.mxu0 }
 0x1e5   :  { %v3011_v31 = vadd.f32 %v2511_v27, %v1347_v29 }
 0x1e6   :  { %v2513_v32 = vpop.f32.mrf.mxu0 }
 0x1e7   :  { %v2514_v33 = vadd.f32 %v2513_v32, %v2512_v30 }
 0x1e8   :  { %v2515_v35 = vpop.f32.mrf.mxu0 }
 0x1e9   :  { %v3013_v36 = vadd.f32 %v2623_v25, %v2514_v33 }
 0x1ea   :  { %v2516_v37 = vpop.f32.mrf.mxu0 }
 0x1eb   :  { %v2517_v38 = vadd.f32 %v2516_v37, %v2515_v35 }
 0x1ec   :  { %v2518_v41 = vpop.f32.mrf.mxu0 }
 0x1ed   :  { %v3015_v42 = vadd.f32 %v2517_v38, %v1357_v40 }
 0x1ee   :  { %v2519_v44 = vpop.f32.mrf.mxu0 }
 0x1ef   :  { %v2520_v45 = vadd.f32 %v2519_v44, %v2518_v41 }
 0x1f1   :  { %v3017_v48 = vadd.f32 %v2626_v34, %v2520_v45 }
 0x21a   :  { %v2633_v49 = vpop.f32.mrf.mxu1 }
 0x21b   :  { %v1445_v5 = vsel %vm1441_vm0, %v2633_v49, -inf }
 0x21c   :  { %v1432_v50 = vpop.f32.mrf.mxu1 }
 0x21d   :  { %v1442_v52 = vsel %vm1441_vm0, %v1432_v50, -inf }
 0x21e   :  { %1443 = vmax.xlane.f32.xlu0 %v1442_v52 }
 0x222   :  { %1446 = vmax.xlane.f32.xlu0 %v1445_v5 }
 0x226   :  { %v2647_v55 = vpop.f32.mrf.mxu0 }
 0x227   :  { %v1623_v6 = vsel %vm1441_vm0, %v2647_v55, -inf }
 0x228   :  { %v1611_v56 = vpop.f32.mrf.mxu0 }
 0x229   :  { %v1620_v59 = vsel %vm1441_vm0, %v1611_v56, -inf }
 0x22a   :  { %1621 = vmax.xlane.f32.xlu1 %v1620_v59 }
 0x22e   :  { %1624 = vmax.xlane.f32.xlu1 %v1623_v6 }
 0x261   :  { %v2661_v62 = vpop.f32.mrf.mxu0 }
 0x262   :  { %v1801_v63 = vsel %vm1441_vm0, %v2661_v62, -inf }
 0x263   :  { %v1789_v60 = vpop.f32.mrf.mxu0  ;;  %1802 = vmax.xlane.f32.xlu1 %v1801_v63 }
 0x264   :  { %v1798_v1 = vsel %vm1441_vm0, %v1789_v60, -inf }
 0x265   :  { %1799 = vmax.xlane.f32.xlu0 %v1798_v1 }
 0x2a7   :  { %v1444_v7 = vpop.xlane.xlu0 %1443 }
 0x2a8   :  { %v1448_v43 = vsub.f32 %v1432_v50, %v1444_v7 }
 0x2aa   :  { %v1450_v10 = vmul.f32 1.442695, %v1448_v43 }
 0x2ab   :  { %v1447_v47 = vpop.xlane.xlu0 %1446 }
 0x2ac   :  { %2719 = vpow2.f32 %v1450_v10  ;;  %v1449_v54 = vsub.f32 %v2633_v49, %v1447_v47 }
 0x2ae   :  { %v1452_v11 = vmul.f32 1.442695, %v1449_v54 }
 0x2b0   :  { %2721 = vpow2.f32 %v1452_v11 }
 0x2b3   :  { %v1622_v58 = vpop.xlane.xlu1 %1621 }
 0x2b4   :  { %v1626_v2 = vsub.f32 %v1611_v56, %v1622_v58 }
 0x2b6   :  { %v1628_v14 = vmul.f32 1.442695, %v1626_v2 }
 0x2b7   :  { %v1625_v8 = vpop.xlane.xlu1 %1624 }
 0x2b8   :  { %2723 = vpow2.f32 %v1628_v14  ;;  %v1627_v9 = vsub.f32 %v2647_v55, %v1625_v8 }
 0x2b9   :  { %v2720_v16 = vpop.eup %2719 }
 0x2ba   :  { %v1630_v18 = vmul.f32 1.442695, %v1627_v9  ;;  %v1454_v19 = vsel %vm1441_vm0, %v2720_v16, 0.0 }
 0x2bb   :  { %1455 = vadd.xlane.f32.xlu0 %v1454_v19 }
 0x2bc   :  { %2725 = vpow2.f32 %v1630_v18 }
 0x2bd   :  { %v2722_v20 = vpop.eup %2721 }
 0x2be   :  { %v1457_v21 = vsel %vm1441_vm0, %v2722_v20, 0.0 }
 0x2bf   :  { %1458 = vadd.xlane.f32.xlu1 %v1457_v21 }
 0x2c5   :  { %v2724_v24 = vpop.eup %2723 }
 0x2c6   :  { %v1632_v25 = vsel %vm1441_vm0, %v2724_v24, 0.0 }
 0x2c7   :  { %1633 = vadd.xlane.f32.xlu0 %v1632_v25 }
 0x2c9   :  { %v2726_v26 = vpop.eup %2725 }
 0x2ca   :  { %v1635_v27 = vsel %vm1441_vm0, %v2726_v26, 0.0 }
 0x2cb   :  { %1636 = vadd.xlane.f32.xlu1 %v1635_v27 }
 0x2ec   :  { %v1803_v29 = vpop.xlane.xlu1 %1802 }
 0x2ed   :  { %v1805_v30 = vsub.f32 %v2661_v62, %v1803_v29 }
 0x2ee   :  { %v1800_v32 = vpop.xlane.xlu0 %1799 }
 0x2ef   :  { %v1808_v33 = vmul.f32 1.442695, %v1805_v30  ;;  %v1804_v34 = vsub.f32 %v1789_v60, %v1800_v32 }
 0x2f1   :  { %2727 = vpow2.f32 %v1808_v33  ;;  %v1806_v35 = vmul.f32 1.442695, %v1804_v34 }
 0x2f3   :  { %2729 = vpow2.f32 %v1806_v35 }
 0x2fe   :  { %v2728_v37 = vpop.eup %2727 }
 0x2ff   :  { %v1813_v38 = vsel %vm1441_vm0, %v2728_v37, 0.0 }
 0x300   :  { %v2730_v40 = vpop.eup %2729  ;;  %1814 = vadd.xlane.f32.xlu1 %v1813_v38 }
 0x301   :  { %v1810_v41 = vsel %vm1441_vm0, %v2730_v40, 0.0 }
 0x302   :  { %1811 = vadd.xlane.f32.xlu0 %v1810_v41 }
 0x344   :  { %v1456_v44 = vpop.xlane.xlu0 %1455 }
 0x345   :  { %2731 = vrcp.f32 %v1456_v44 }
 0x348   :  { %v1459_v45 = vpop.xlane.xlu1 %1458 }
 0x349   :  { %2733 = vrcp.f32 %v1459_v45 }
 0x350   :  { %v1634_v49 = vpop.xlane.xlu0 %1633 }
 0x351   :  { %2735 = vrcp.f32 %v1634_v49 }
 0x352   :  { %v2732_v50 = vpop.eup %2731 }
 0x353   :  { %v1461_v52 = vmul.f32 %v2732_v50, %v2720_v16 }
 0x354   :  { %v1637_v5 = vpop.xlane.xlu1 %1636 }
 0x355   :  { %2737 = vrcp.f32 %v1637_v5  ;;  %2638 = vmatprep.mubr.msk.f32.mxu1 %vm1441_vm0, %v1461_v52 }
 0x356   :  { %v2734_v55 = vpop.eup %2733 }
 0x357   :  { %v1463_v56 = vmul.f32 %v2734_v55, %v2722_v20 }
 0x359   :  { %2639 = vmatmul.mubr.msk.f32.vlgmr.msra.gmra.mxu1 %vm1441_vm0, %v1463_v56 }
 0x35a   :  { %2649 = vmatpush3.msra.mxu1 %v3005_v17 }
 0x35b   :  { %2650 = vmatprep.subr.mxu1 %v3003_v13 }
 0x35c   :  { %2651 = vmatpush3.msra.mxu1 %v3003_v13 }
 0x35d   :  { %2662 = vmatprep.subr.mxu1 %v3001_v57 }
 0x35e   :  { %v2736_v59 = vpop.eup %2735 }
 0x35f   :  { %v1639_v6 = vmul.f32 %v2736_v59, %v2724_v24 }
 0x361   :  { %2652 = vmatprep.mubr.msk.f32.mxu1 %vm1441_vm0, %v1639_v6 }
 0x362   :  { %v2738_v62 = vpop.eup %2737 }
 0x363   :  { %v1641_v63 = vmul.f32 %v2738_v62, %v2726_v26 }
 0x365   :  { %2653 = vmatmul.mubr.msk.f32.vlgmr.msra.gmra.mxu1 %vm1441_vm0, %v1641_v63 }
 0x366   :  { %2663 = vmatpush3.msra.mxu1 %v3001_v57 }
 0x367   :  { %2664 = vmatprep.subr.mxu1 %v2999_v4 }
 0x368   :  { %2665 = vmatpush3.msra.mxu1 %v2999_v4 }
 0x369   :  { %2669 = vmatprep.subr.mxu1 %v2995_v3 }
 0x389   :  { %v1815_v17 = vpop.xlane.xlu1 %1814 }
 0x38a   :  { %2739 = vrcp.f32 %v1815_v17 }
 0x38b   :  { %v1812_v13 = vpop.xlane.xlu0 %1811 }
 0x38c   :  { %2741 = vrcp.f32 %v1812_v13 }
 0x397   :  { %v2740_v60 = vpop.eup %2739 }
 0x398   :  { %v1819_v43 = vmul.f32 %v2740_v60, %v2728_v37 }
 0x399   :  { %v2742_v1 = vpop.eup %2741 }
 0x39a   :  { %v1817_v7 = vmul.f32 %v2742_v1, %v2730_v40 }
 0x39c   :  { %2666 = vmatprep.mubr.msk.f32.mxu1 %vm1441_vm0, %v1817_v7 }
 0x39d   :  { %2667 = vmatmul.mubr.msk.f32.vlgmr.msra.gmra.mxu1 %vm1441_vm0, %v1819_v43 }
 0x39e   :  { %2670 = vmatpush3.xpose.msra.mxu1 %v2995_v3  ;;  %2673 = vmatprep.mubr.f32.mxu1 %v2976_v46 }
 0x39f   :  { %2671 = vmatprep.subr.mxu1 %v2991_v51 }
 0x3a2   :  { %2672 = vmatpush3.xpose.msra.mxu1 %v2991_v51 }
 0x3a3   :  { %2690 = vmatprep.subr.mxu1 %v3013_v36 }
 0x3a5   :  { %2674 = vmatmul.mubr.f32.vlgmr.msra.gmra.mxu1 %v2978_v12 }
 0x3a6   :  { %2691 = vmatpush3.msra.mxu1 %v3013_v36 }
 0x3a7   :  { %2692 = vmatprep.subr.mxu1 %v3011_v31 }
 0x3a8   :  { %2693 = vmatpush3.msra.mxu1 %v3011_v31 }
 0x3a9   :  { %2697 = vmatprep.subr.mxu1 %v2997_v61 }
 0x419   :  { %v2640_v4 = vpop.f32.mrf.mxu1 }
 0x41a   :  { %2438 = vst [vmem:[#allocation7 + $0x18] sm:$0xff] %v2640_v4 }
 0x41b   :  { %v1536_v3 = vpop.f32.mrf.mxu1 }
 0x41c   :  { %2435 = vst [vmem:[#allocation7] sm:$0xff] %v1536_v3 }
 0x425   :  { %v2654_v46 = vpop.f32.mrf.mxu1 }
 0x426   :  { %2444 = vst [vmem:[#allocation7 + $0x48] sm:$0xff] %v2654_v46 }
 0x427   :  { %v1714_v57 = vpop.f32.mrf.mxu1 }
 0x428   :  { %2441 = vst [vmem:[#allocation7 + $0x30] sm:$0xff] %v1714_v57 }
 0x45d   :  { %v2668_v51 = vpop.f32.mrf.mxu1 }
 0x45e   :  { %2439 = vst [vmem:[#allocation7 + $0x20] sm:$0xff] %v2668_v51 }
 0x45f   :  { %v1892_v10 = vpop.f32.mrf.mxu1 }
 0x460   :  { %2436 = vst [vmem:[#allocation7 + $0x8] sm:$0xff] %v1892_v10 }
 0x465   :  { %v2675_v12 = vpop.f32.mrf.mxu1 }
 0x466   :  { %v1979_v36 = vsel %vm1441_vm0, %v2675_v12, -inf }
 0x467   :  { %1980 = vmax.xlane.f32.xlu1 %v1979_v36  ;;  %v1967_v47 = vpop.f32.mrf.mxu1 }
 0x468   :  { %v1976_v31 = vsel %vm1441_vm0, %v1967_v47, -inf }
 0x469   :  { %1977 = vmax.xlane.f32.xlu0 %v1976_v31 }
 0x4f0   :  { %v1981_v54 = vpop.xlane.xlu1 %1980 }
 0x4f1   :  { %v1983_v11 = vsub.f32 %v2675_v12, %v1981_v54 }
 0x4f2   :  { %v1978_v58 = vpop.xlane.xlu0 %1977 }
 0x4f3   :  { %v1986_v2 = vmul.f32 1.442695, %v1983_v11  ;;  %v1982_v14 = vsub.f32 %v1967_v47, %v1978_v58 }
 0x4f5   :  { %2743 = vpow2.f32 %v1986_v2  ;;  %v1984_v8 = vmul.f32 1.442695, %v1982_v14 }
 0x4f7   :  { %2745 = vpow2.f32 %v1984_v8 }
 0x502   :  { %v2744_v9 = vpop.eup %2743 }
 0x503   :  { %v1991_v16 = vsel %vm1441_vm0, %v2744_v9, 0.0 }
 0x504   :  { %v2746_v18 = vpop.eup %2745  ;;  %1992 = vadd.xlane.f32.xlu1 %v1991_v16 }
 0x505   :  { %v1988_v19 = vsel %vm1441_vm0, %v2746_v18, 0.0 }
 0x506   :  { %1989 = vadd.xlane.f32.xlu0 %v1988_v19 }
 0x58d   :  { %v1993_v20 = vpop.xlane.xlu1 %1992 }
 0x58e   :  { %2747 = vrcp.f32 %v1993_v20 }
 0x58f   :  { %v1990_v21 = vpop.xlane.xlu0 %1989 }
 0x590   :  { %2749 = vrcp.f32 %v1990_v21 }
 0x59b   :  { %v2748_v24 = vpop.eup %2747 }
 0x59c   :  { %v1997_v27 = vmul.f32 %v2748_v24, %v2744_v9 }
 0x59d   :  { %v2750_v25 = vpop.eup %2749 }
 0x59e   :  { %v1995_v26 = vmul.f32 %v2750_v25, %v2746_v18 }
 0x5a0   :  { %2680 = vmatprep.mubr.msk.f32.mxu0 %vm1441_vm0, %v1995_v26 }
 0x5a1   :  { %2681 = vmatmul.mubr.msk.f32.vlgmr.msra.gmra.mxu0 %vm1441_vm0, %v1997_v27 }
 0x5a2   :  { %2684 = vmatpush3.xpose.msra.mxu0 %v3008_v23  ;;  %2687 = vmatprep.mubr.f32.mxu0 %v2980_v0 }
 0x5a3   :  { %2685 = vmatprep.subr.mxu0 %v2988_v39 }
 0x5a6   :  { %2686 = vmatpush3.xpose.msra.mxu0 %v2988_v39 }
 0x5a7   :  { %2704 = vmatprep.subr.mxu0 %v3017_v48 }
 0x5a9   :  { %2688 = vmatmul.mubr.f32.vlgmr.msra.gmra.mxu0 %v2982_v15 }
 0x5aa   :  { %2705 = vmatpush3.msra.mxu0 %v3017_v48 }
 0x5ab   :  { %2706 = vmatprep.subr.mxu0 %v3015_v42 }
 0x5ac   :  { %2707 = vmatpush3.msra.mxu0 %v3015_v42 }
 0x661   :  { %v2682_v29 = vpop.f32.mrf.mxu0 }
 0x662   :  { %2445 = vst [vmem:[#allocation7 + $0x50] sm:$0xff] %v2682_v29 }
 0x663   :  { %v2070_v30 = vpop.f32.mrf.mxu0 }
 0x664   :  { %2442 = vst [vmem:[#allocation7 + $0x38] sm:$0xff] %v2070_v30 }
 0x669   :  { %v2689_v23 = vpop.f32.mrf.mxu0 }
 0x66a   :  { %v2157_v0 = vsel %vm1441_vm0, %v2689_v23, -inf }
 0x66b   :  { %2158 = vmax.xlane.f32.xlu1 %v2157_v0  ;;  %v2145_v32 = vpop.f32.mrf.mxu0 }
 0x66c   :  { %v2154_v39 = vsel %vm1441_vm0, %v2145_v32, -inf }
 0x66d   :  { %2155 = vmax.xlane.f32.xlu0 %v2154_v39 }
 0x6f4   :  { %v2159_v33 = vpop.xlane.xlu1 %2158 }
 0x6f5   :  { %v2161_v15 = vsub.f32 %v2689_v23, %v2159_v33 }
 0x6f6   :  { %v2156_v34 = vpop.xlane.xlu0 %2155 }
 0x6f7   :  { %v2164_v48 = vmul.f32 1.442695, %v2161_v15  ;;  %v2160_v35 = vsub.f32 %v2145_v32, %v2156_v34 }
 0x6f9   :  { %2751 = vpow2.f32 %v2164_v48  ;;  %v2162_v37 = vmul.f32 1.442695, %v2160_v35 }
 0x6fb   :  { %2753 = vpow2.f32 %v2162_v37 }
 0x706   :  { %v2752_v42 = vpop.eup %2751 }
 0x707   :  { %v2169_v38 = vsel %vm1441_vm0, %v2752_v42, 0.0 }
 0x708   :  { %v2754_v40 = vpop.eup %2753  ;;  %2170 = vadd.xlane.f32.xlu1 %v2169_v38 }
 0x709   :  { %v2166_v41 = vsel %vm1441_vm0, %v2754_v40, 0.0 }
 0x70a   :  { %2167 = vadd.xlane.f32.xlu0 %v2166_v41 }
 0x791   :  { %v2171_v44 = vpop.xlane.xlu1 %2170 }
 0x792   :  { %2755 = vrcp.f32 %v2171_v44 }
 0x793   :  { %v2168_v45 = vpop.xlane.xlu0 %2167 }
 0x794   :  { %2757 = vrcp.f32 %v2168_v45 }
 0x79f   :  { %v2756_v49 = vpop.eup %2755 }
 0x7a0   :  { %v2175_v5 = vmul.f32 %v2756_v49, %v2752_v42 }
 0x7a1   :  { %v2758_v50 = vpop.eup %2757 }
 0x7a2   :  { %v2173_v52 = vmul.f32 %v2758_v50, %v2754_v40 }
 0x7a4   :  { %2694 = vmatprep.mubr.msk.f32.mxu1 %vm1441_vm0, %v2173_v52 }
 0x7a5   :  { %2695 = vmatmul.mubr.msk.f32.vlgmr.msra.gmra.mxu1 %vm1441_vm0, %v2175_v5 }
 0x7a6   :  { %2698 = vmatpush3.xpose.msra.mxu1 %v2997_v61  ;;  %2701 = vmatprep.mubr.f32.mxu1 %v2984_v22 }
 0x7a7   :  { %2699 = vmatprep.subr.mxu1 %v2993_v53 }
 0x7aa   :  { %2700 = vmatpush3.xpose.msra.mxu1 %v2993_v53 }
 0x7ad   :  { %2702 = vmatmul.mubr.f32.vlgmr.msra.gmra.mxu1 %v2986_v28 }
 0x865   :  { %v2696_v55 = vpop.f32.mrf.mxu1 }
 0x866   :  { %2440 = vst [vmem:[#allocation7 + $0x28] sm:$0xff] %v2696_v55 }
 0x867   :  { %v2248_v56 = vpop.f32.mrf.mxu1 }
 0x868   :  { %2437 = vst [vmem:[#allocation7 + $0x10] sm:$0xff] %v2248_v56 }
 0x86d   :  { %v2703_v59 = vpop.f32.mrf.mxu1 }
 0x86e   :  { %v2335_v6 = vsel %vm1441_vm0, %v2703_v59, -inf }
 0x86f   :  { %2336 = vmax.xlane.f32.xlu1 %v2335_v6  ;;  %v2323_v62 = vpop.f32.mrf.mxu1 }
 0x870   :  { %v2332_v63 = vsel %vm1441_vm0, %v2323_v62, -inf }
 0x871   :  { %2333 = vmax.xlane.f32.xlu0 %v2332_v63 }
 0x8f8   :  { %v2337_v61 = vpop.xlane.xlu1 %2336 }
 0x8f9   :  { %v2339_v22 = vsub.f32 %v2703_v59, %v2337_v61 }
 0x8fa   :  { %v2334_v17 = vpop.xlane.xlu0 %2333 }
 0x8fb   :  { %v2342_v13 = vmul.f32 1.442695, %v2339_v22  ;;  %v2338_v60 = vsub.f32 %v2323_v62, %v2334_v17 }
 0x8fd   :  { %2759 = vpow2.f32 %v2342_v13  ;;  %v2340_v53 = vmul.f32 1.442695, %v2338_v60 }
 0x8ff   :  { %2761 = vpow2.f32 %v2340_v53 }
 0x90a   :  { %v2760_v28 = vpop.eup %2759 }
 0x90b   :  { %v2347_v1 = vsel %vm1441_vm0, %v2760_v28, 0.0 }
 0x90c   :  { %v2762_v7 = vpop.eup %2761  ;;  %2348 = vadd.xlane.f32.xlu1 %v2347_v1 }
 0x90d   :  { %v2344_v43 = vsel %vm1441_vm0, %v2762_v7, 0.0 }
 0x90e   :  { %2345 = vadd.xlane.f32.xlu0 %v2344_v43 }
 0x995   :  { %v2349_v4 = vpop.xlane.xlu1 %2348 }
 0x996   :  { %2763 = vrcp.f32 %v2349_v4 }
 0x997   :  { %v2346_v3 = vpop.xlane.xlu0 %2345 }
 0x998   :  { %2765 = vrcp.f32 %v2346_v3 }
 0x9a3   :  { %v2764_v46 = vpop.eup %2763 }
 0x9a4   :  { %v2353_v10 = vmul.f32 %v2764_v46, %v2760_v28 }
 0x9a5   :  { %v2766_v57 = vpop.eup %2765 }
 0x9a6   :  { %v2351_v51 = vmul.f32 %v2766_v57, %v2762_v7 }
 0x9a8   :  { %2708 = vmatprep.mubr.msk.f32.mxu0 %vm1441_vm0, %v2351_v51 }
 0x9a9   :  { %2709 = vmatmul.mubr.msk.f32.vlgmr.msra.gmra.mxu0 %vm1441_vm0, %v2353_v10 }
 0xa69   :  { %v2710_v12 = vpop.f32.mrf.mxu0 }
 0xa6a   :  { %2446 = vst [vmem:[#allocation7 + $0x58] sm:$0xff] %v2710_v12 }
 0xa6b   :  { %v2426_v36 = vpop.f32.mrf.mxu0 }
 0xa6c   :  { %2443 = vst [vmem:[#allocation7 + $0x40] sm:$0xff] %v2426_v36 }
 0xa6d   :  { %2830 = shalt.err (!%p2827_p0)
}
 0xa6e   :  { %2458 = dma.vmem_to_hbm [thread:$0]  %s2453_s1, 1536, %s3095_s2, [#allocation4], %s2846_s12, %s2846_s12, %s2847_s13  }
 0xa6f   :  { %2843 = dma.done.wait [#allocation4], 1536  }
 0xa70   :  { %2844 = vsyncadd [#allocation4], 4294965760 }
 0xa71   :  { %2462 = vsyncpa [#allocation3], 1 }
 0xa72   :  { %2463 = vsyncpa [#allocation6], 1 }
 0xa73   :  { %2464 = vsyncpa [#allocation4], 1 }

</bundles_post_ra>
